<compile_context>
chip_gen: v6e
topology: v6e:2x2x1
jax: 0.10.0
libtpu: 0.0.40
codegen_flags: <defaults>
</compile_context>

<pallas_src>
import jax
import jax.numpy as jnp
from jax.experimental import pallas as pl
from jax.experimental.pallas import tpu as pltpu


_NCORES = 2  # outer ("parallel") grid axis: lets a v7x megacore split the N
             # axis across its 2 TensorCores; on single-TC v5e/v6e it is just a
             # 2-iteration loop with negligible cost.


def _round_up(a, b):
    return (a + b - 1) // b * b


def _pick_tile_n(n_rows, kp):
    # Bigger tiles amortize the ~0.35us/step overhead; cap so the (tile_n, Kp)
    # f32 intermediates (scores + one-hot) stay a few MiB — safe inside the
    # 32 MiB scoped-VMEM budget on every generation (v7x physical is 64 MiB).
    t = 1024 if kp <= 512 else 512
    per_core = -(-n_rows // _NCORES)
    return min(t, max(128, _round_up(per_core, 128)))


def _vq_kernel(n_ref,                         # scalar prefetch: (1,) int32 = N valid rows
               x_ref, w_ref, w2h_ref,         # inputs
               q_ref, idx_ref, dw_ref, encsum_ref, sse_ref,   # outputs
               dw_acc, es_acc, sse_acc):      # VMEM scratch accumulators
    i = pl.program_id(1)
    tiles_per_core = pl.num_programs(1)

    @pl.when(i == 0)
    def _init():
        dw_acc[...] = jnp.zeros_like(dw_acc)
        es_acc[...] = jnp.zeros_like(es_acc)
        sse_acc[...] = jnp.zeros_like(sse_acc)

    x = x_ref[...].astype(jnp.float32)        # (tile_n, D)
    w = w_ref[...]                            # (Kp, D) f32, resident
    w2h = w2h_ref[...]                        # (1, Kp) = 0.5*||w||^2, pad cols = 1e30
    tn = x.shape[0]
    kp = w.shape[0]

    # score = x.w - 0.5*||w||^2  ->  argmax == argmin of the full distance.
    # (per-row ||x||^2 is constant and dropped; no -2 scale pass over (tn,Kp))
    xw = jax.lax.dot_general(x, w, (((1,), (1,)), ((), ())),
                             preferred_element_type=jnp.float32)   # MXU (tn, Kp)
    s = xw - w2h
    smax = jnp.max(s, axis=1, keepdims=True)                       # (tn, 1)
    col = jax.lax.broadcasted_iota(jnp.int32, (tn, kp), 1)
    idx_col = jnp.min(jnp.where(s == smax, col, kp), axis=1, keepdims=True)

    enc = (col == idx_col).astype(jnp.float32)                     # exact one-hot (tn, Kp)
    q = jnp.dot(enc, w, preferred_element_type=jnp.float32)        # (tn, D)
    q_ref[...] = q.astype(q_ref.dtype)

    # Lane-dense indices: reconstruct as a (1, tn) row via two tiny MXU matmuls.
    # Base-256 hi/lo split keeps every operand exactly representable regardless
    # of the MXU's internal matmul precision.
    k2 = jax.lax.broadcasted_iota(jnp.int32, (2, kp), 1)
    rsel = jax.lax.broadcasted_iota(jnp.int32, (2, kp), 0)
    k_split = jnp.where(rsel == 0, k2 >> 8, k2 & 255).astype(jnp.float32)  # (2, Kp)
    pair = jax.lax.dot_general(k_split, enc, (((1,), (1,)), ((), ())),
                               preferred_element_type=jnp.float32)  # (2, tn)
    idx_row = (pair[0:1, :] * 256.0 + pair[1:2, :]).astype(jnp.int32)  # (1, tn)
    idx_ref[...] = idx_row[None]                                    # (1, 1, tn)

    # N-padding mask: only enc-sum and sse need it (dw is immune because padded
    # x rows are exactly zero so their outer products vanish).
    t = pl.program_id(0) * tiles_per_core + i
    rows = t * tn + jax.lax.broadcasted_iota(jnp.int32, (tn, 1), 0)
    valid = (rows < n_ref[0]).astype(jnp.float32)                   # (tn, 1)

    # EMA numerator dw = enc^T @ x (MXU), enc column sums via a skinny
    # valid^T @ enc matmul (rides on MXU slack instead of a (tn,Kp) VPU mask).
    dw_acc[...] += jax.lax.dot_general(enc, x, (((0,), (0,)), ((), ())),
                                       preferred_element_type=jnp.float32)  # (Kp, D)
    es_acc[...] += jax.lax.dot_general(valid, enc, (((0,), (0,)), ((), ())),
                                       preferred_element_type=jnp.float32)  # (1, Kp)

    # mse numerator directly from (q - x)^2 (matches torch, no cancellation).
    diff = q - x
    per_row = jnp.sum(diff * diff, axis=1, keepdims=True) * valid   # (tn, 1)
    sse_acc[...] += jnp.sum(per_row, axis=0, keepdims=True)         # (1, 1)

    @pl.when(i == tiles_per_core - 1)
    def _fin():
        dw_ref[...] = dw_acc[...][None]
        encsum_ref[...] = es_acc[...][None]
        sse_ref[...] = sse_acc[...][None]


def _vq_pallas(x_flat, embedding_w, *, num_embeddings, tile_n=None):
    """Runs the tiled VQ kernel.  Returns (q, idx, dw, enc_sum, sse)."""
    N, D = x_flat.shape
    K = num_embeddings
    Kp = _round_up(K, 128)                       # lane/MXU-friendly codebook width
    if tile_n is None:
        tile_n = _pick_tile_n(N, Kp)
    Np = _round_up(N, _NCORES * tile_n)
    tpc = Np // (_NCORES * tile_n)               # tiles per core
    num_tiles = _NCORES * tpc

    w32 = embedding_w.astype(jnp.float32)
    w_pad = jnp.pad(w32, ((0, Kp - K), (0, 0))) if Kp != K else w32
    w2h = 0.5 * jnp.sum(w32 * w32, axis=1)       # computed once, resident in VMEM
    if Kp != K:
        w2h = jnp.pad(w2h, (0, Kp - K), constant_values=1e30)  # pad codes never win
    w2h = w2h.reshape(1, Kp)
    # Activations stay in their native dtype (kernel upcasts the resident tile).
    x_pad = jnp.pad(x_flat, ((0, Np - N), (0, 0))) if Np != N else x_flat
    n_arr = jnp.array([N], dtype=jnp.int32)      # scalar prefetch -> SMEM

    q, idx3, dw_p, es_p, sse_p = pl.pallas_call(
        _vq_kernel,
        grid_spec=pltpu.PrefetchScalarGridSpec(
            num_scalar_prefetch=1,
            grid=(_NCORES, tpc),
            in_specs=[
                pl.BlockSpec((tile_n, D), lambda c, i, n: (c * tpc + i, 0)),  # x (streamed)
                pl.BlockSpec((Kp, D), lambda c, i, n: (0, 0)),                # codebook (resident)
                pl.BlockSpec((1, Kp), lambda c, i, n: (0, 0)),                # 0.5*||w||^2 (resident)
            ],
            out_specs=(
                pl.BlockSpec((tile_n, D), lambda c, i, n: (c * tpc + i, 0)),      # quantized
                pl.BlockSpec((1, 1, tile_n), lambda c, i, n: (c * tpc + i, 0, 0)),  # indices (lane-dense)
                pl.BlockSpec((1, Kp, D), lambda c, i, n: (c, 0, 0)),              # dw (per core, once)
                pl.BlockSpec((1, 1, Kp), lambda c, i, n: (c, 0, 0)),              # enc col-sums (per core)
                pl.BlockSpec((1, 1, 1), lambda c, i, n: (c, 0, 0)),               # sse (per core)
            ),
            scratch_shapes=[
                pltpu.VMEM((Kp, D), jnp.float32),   # dw accumulator
                pltpu.VMEM((1, Kp), jnp.float32),   # enc-sum accumulator
                pltpu.VMEM((1, 1), jnp.float32),    # sse accumulator
            ],
        ),
        out_shape=(
            jax.ShapeDtypeStruct((Np, D), x_flat.dtype),
            jax.ShapeDtypeStruct((num_tiles, 1, tile_n), jnp.int32),
            jax.ShapeDtypeStruct((_NCORES, Kp, D), jnp.float32),
            jax.ShapeDtypeStruct((_NCORES, 1, Kp), jnp.float32),
            jax.ShapeDtypeStruct((_NCORES, 1, 1), jnp.float32),
        ),
        compiler_params=pltpu.CompilerParams(
            dimension_semantics=("parallel", "arbitrary"),
            vmem_limit_bytes=32 * 1024 * 1024,
        ),
    )(n_arr, x_pad, w_pad, w2h)

    idx = idx3.reshape(Np)[:N]
    dw = jnp.sum(dw_p, axis=0)[:K]               # (K, D)
    enc_sum = jnp.sum(es_p, axis=(0, 1))[:K]     # (K,)
    sse = jnp.sum(sse_p)                         # scalar
    return q[:N], idx, dw, enc_sum, sse


def vq_ema_forward(x, embedding_w, ema_cluster_size, ema_w, *,
                   num_embeddings, embedding_dim, commitment_cost,
                   decay, epsilon, training=True, compute_loss=True):
    """Reproduces VectorQuantizerEMA.forward.

    Returns (loss, quantized, perplexity, encoding_indices, encodings, new_state)
    where new_state = (ema_cluster_size, ema_w, embedding_weight) — the buffers
    torch mutates in place when self.training is True.
    """
    B = x.shape[0]
    D = embedding_dim
    K = num_embeddings
    flat3 = x.reshape(B, -1, D)                  # == torch .reshape(B, -1, D)
    L = flat3.shape[1]
    N = B * L
    xf = flat3.reshape(N, D)

    q, idx, dw, enc_sum, sse = _vq_pallas(xf, embedding_w, num_embeddings=K)

    # TODO(synk): torch returns int64 encoding_indices; int32 is TPU-native.
    encoding_indices = idx.reshape(B, L)
    # One-hot encodings are reconstructed lazily here (f32, matches torch) — the
    # kernel never writes the (N, K) tensor to HBM.
    encodings = jax.nn.one_hot(encoding_indices, K, dtype=jnp.float32)  # (B, L, K)

    inputs_2d = xf.reshape(B, L * D).astype(jnp.float32)
    quantized_2d = q.reshape(B, L * D).astype(jnp.float32)

    new_state = (ema_cluster_size, ema_w, embedding_w)
    if training:
        # EMA cluster-size / codebook update (functional version of the in-place
        # buffer mutation in the torch module).
        cluster = ema_cluster_size * decay + (1.0 - decay) * enc_sum
        n = jnp.sum(cluster)
        cluster = (cluster + epsilon) / (n + K * epsilon) * n
        new_ema_w = ema_w * decay + (1.0 - decay) * dw
        new_embedding = new_ema_w / cluster[:, None]
        new_state = (cluster, new_ema_w, new_embedding)

    if compute_loss:
        e_latent_loss = sse / (N * D)            # mean((quantized - inputs)^2)
        loss = commitment_cost * e_latent_loss
    else:
        loss = None

    # straight-through estimator (values equal quantized)
    quantized_out = inputs_2d + jax.lax.stop_gradient(quantized_2d - inputs_2d)

    # perplexity exactly as torch: mean over the batch dim of (B, L, K), then
    # sum over all (L, K) entries.
    avg_probs = jnp.mean(encodings, axis=0)      # (L, K)
    perplexity = jnp.exp(-jnp.sum(avg_probs * jnp.log(avg_probs + 1e-10)))

    return loss, quantized_out, perplexity, encoding_indices, encodings, new_state


if __name__ == "__main__":
    key = jax.random.PRNGKey(0)
    k_x, k_emb, k_ema = jax.random.split(key, 3)

    # Small shapes consistent with the module: NCHW input, embedding_dim divides C*H*W.
    B, C, H, W = 2, 4, 16, 16
    NUM_EMBEDDINGS, EMBEDDING_DIM = 32, 16
    COMMITMENT_COST, DECAY, EPSILON = 0.25, 0.99, 1e-5

    x = jax.random.normal(k_x, (B, C, H, W), dtype=jnp.float32)

    # Deterministic parameter init matching the module's __init__:
    #   embedding.weight ~ U(-1/K, 1/K);  ema_w ~ N(0, 1);  ema_cluster_size = 0.
    embedding_w = jax.random.uniform(
        k_emb, (NUM_EMBEDDINGS, EMBEDDING_DIM),
        minval=-1.0 / NUM_EMBEDDINGS, maxval=1.0 / NUM_EMBEDDINGS,
        dtype=jnp.float32)
    ema_w = jax.random.normal(k_ema, (NUM_EMBEDDINGS, EMBEDDING_DIM), dtype=jnp.float32)
    ema_cluster_size = jnp.zeros((NUM_EMBEDDINGS,), dtype=jnp.float32)

    loss, quantized, perplexity, indices, encodings, new_state = vq_ema_forward(
        x, embedding_w, ema_cluster_size, ema_w,
        num_embeddings=NUM_EMBEDDINGS, embedding_dim=EMBEDDING_DIM,
        commitment_cost=COMMITMENT_COST, decay=DECAY, epsilon=EPSILON,
        training=True, compute_loss=True)

    jax.block_until_ready((loss, quantized, perplexity, indices, encodings, new_state))
    print("KERNEL_OK")
</pallas_src>

<mosaic_0001>
module attributes {stable_mosaic.version = 11 : i64} {
  func.func @_vq_kernel(%arg0: i32, %arg1: i32, %arg2: memref<1xi32, #tpu.memory_space<smem>>, %arg3: memref<128x16xf32, #tpu.memory_space<vmem>>, %arg4: memref<128x16xf32, #tpu.memory_space<vmem>>, %arg5: memref<1x128xf32, #tpu.memory_space<vmem>>, %arg6: memref<128x16xf32, #tpu.memory_space<vmem>>, %arg7: memref<1x1x128xi32, #tpu.memory_space<vmem>>, %arg8: memref<1x128x16xf32, #tpu.memory_space<vmem>>, %arg9: memref<1x1x128xf32, #tpu.memory_space<vmem>>, %arg10: memref<1x1x1xf32, #tpu.memory_space<vmem>>, %arg11: memref<128x16xf32, #tpu.memory_space<vmem>>, %arg12: memref<1x128xf32, #tpu.memory_space<vmem>>, %arg13: memref<1x1xf32, #tpu.memory_space<vmem>>) attributes {dimension_semantics = [#tpu.dimension_semantics<parallel>, #tpu.dimension_semantics<arbitrary>], iteration_bounds = array<i64: 2, 1>, scalar_prefetch = 1 : i64, scratch_operands = 3 : i64, tpu.core_type = #tpu.core_type<tc>, window_params = [{transform_indices = @transform_0, window_bounds = array<i64: 128, 16>}, {pipeline_mode = #tpu.pipeline_mode<synchronous>, transform_indices = @transform_1, window_bounds = array<i64: 128, 16>}, {pipeline_mode = #tpu.pipeline_mode<synchronous>, transform_indices = @transform_2, window_bounds = array<i64: 1, 128>}, {transform_indices = @transform_3, window_bounds = array<i64: 128, 16>}, {transform_indices = @transform_4, window_bounds = array<i64: 1, 1, 128>}, {transform_indices = @transform_5, window_bounds = array<i64: 1, 128, 16>}, {transform_indices = @transform_6, window_bounds = array<i64: 1, 1, 128>}, {transform_indices = @transform_7, window_bounds = array<i64: 1, 1, 1>}]} {
    %c0_i32 = arith.constant 0 : i32
    %0 = arith.cmpi eq, %arg1, %c0_i32 : i32
    %1 = arith.extui %0 : i1 to i32
    %c0_i32_0 = arith.constant 0 : i32
    %2 = arith.cmpi ne, %1, %c0_i32_0 : i32
    scf.if %2 {
      %cst_37 = arith.constant 0.000000e+00 : f32
      %75 = vector.broadcast %cst_37 : f32 to vector<128x16xf32>
      %c0_38 = arith.constant 0 : index
      %c0_39 = arith.constant 0 : index
      %76 = vector.load %arg11[%c0_38, %c0_39] : memref<128x16xf32, #tpu.memory_space<vmem>>, vector<128x16xf32>
      tpu.vector_store %arg11[%c0_38, %c0_39], %75 {strides = array<i32>} : memref<128x16xf32, #tpu.memory_space<vmem>>, vector<128x16xf32>,
      %cst_40 = arith.constant 0.000000e+00 : f32
      %77 = vector.broadcast %cst_40 : f32 to vector<1x128xf32>
      %c0_41 = arith.constant 0 : index
      %c0_42 = arith.constant 0 : index
      %78 = vector.load %arg12[%c0_41, %c0_42] : memref<1x128xf32, #tpu.memory_space<vmem>>, vector<1x128xf32>
      tpu.vector_store %arg12[%c0_41, %c0_42], %77 {strides = array<i32>} : memref<1x128xf32, #tpu.memory_space<vmem>>, vector<1x128xf32>,
      %cst_43 = arith.constant 0.000000e+00 : f32
      %79 = vector.broadcast %cst_43 : f32 to vector<1x1xf32>
      %c0_44 = arith.constant 0 : index
      %c0_45 = arith.constant 0 : index
      %80 = vector.load %arg13[%c0_44, %c0_45] : memref<1x1xf32, #tpu.memory_space<vmem>>, vector<1x1xf32>
      tpu.vector_store %arg13[%c0_44, %c0_45], %79 {strides = array<i32>} : memref<1x1xf32, #tpu.memory_space<vmem>>, vector<1x1xf32>,
    } else {
    }
    %c0 = arith.constant 0 : index
    %c0_1 = arith.constant 0 : index
    %3 = vector.load %arg3[%c0, %c0_1] : memref<128x16xf32, #tpu.memory_space<vmem>>, vector<128x16xf32>
    %c0_2 = arith.constant 0 : index
    %c0_3 = arith.constant 0 : index
    %4 = vector.load %arg4[%c0_2, %c0_3] : memref<128x16xf32, #tpu.memory_space<vmem>>, vector<128x16xf32>
    %c0_4 = arith.constant 0 : index
    %c0_5 = arith.constant 0 : index
    %5 = vector.load %arg5[%c0_4, %c0_5] : memref<1x128xf32, #tpu.memory_space<vmem>>, vector<1x128xf32>
    %cst = arith.constant dense<0.000000e+00> : vector<128x128xf32>
    %6 = tpu.matmul %3, %4, %cst {dimension_numbers = #tpu.dot_dimension_numbers<[1], [1], [0], [0], [0, 0, 1, 0], [], []>} : vector<128x16xf32>, vector<128x16xf32>, vector<128x128xf32> -> vector<128x128xf32>
    %7 = vector.broadcast %5 : vector<1x128xf32> to vector<128x128xf32>
    %8 = arith.subf %6, %7 : vector<128x128xf32>
    %cst_6 = arith.constant dense<0xFF800000> : vector<128xf32>
    %9 = vector.multi_reduction <maximumf>, %8, %cst_6 [1] : vector<128x128xf32> to vector<128xf32>
    %10 = vector.shape_cast %9 : vector<128xf32> to vector<128x1xf32>
    %11 = tpu.iota {dimensions = array<i32: 1>} : vector<128x128xi32>
    %12 = vector.broadcast %10 : vector<128x1xf32> to vector<128x128xf32>
    %13 = arith.cmpf oeq, %8, %12 : vector<128x128xf32>
    %c128_i32 = arith.constant 128 : i32
    %14 = vector.broadcast %c128_i32 : i32 to vector<128x128xi32>
    %15 = arith.select %13, %11, %14 : vector<128x128xi1>, vector<128x128xi32>
    %cst_7 = arith.constant dense<2147483647> : vector<128xi32>
    %16 = vector.multi_reduction <minsi>, %15, %cst_7 [1] : vector<128x128xi32> to vector<128xi32>
    %17 = vector.shape_cast %16 : vector<128xi32> to vector<128x1xi32>
    %18 = vector.broadcast %17 : vector<128x1xi32> to vector<128x128xi32>
    %19 = arith.cmpi eq, %11, %18 : vector<128x128xi32>
    %20 = arith.extui %19 : vector<128x128xi1> to vector<128x128xi32>
    %21 = arith.sitofp %20 : vector<128x128xi32> to vector<128x128xf32>
    %cst_8 = arith.constant dense<0.000000e+00> : vector<128x16xf32>
    %22 = tpu.matmul %21, %4, %cst_8 {dimension_numbers = #tpu.dot_dimension_numbers<[1], [0], [0], [1], [0, 0, 1, 1], [], []>} : vector<128x128xf32>, vector<128x16xf32>, vector<128x16xf32> -> vector<128x16xf32>
    %c0_9 = arith.constant 0 : index
    %c0_10 = arith.constant 0 : index
    %23 = vector.load %arg6[%c0_9, %c0_10] : memref<128x16xf32, #tpu.memory_space<vmem>>, vector<128x16xf32>
    tpu.vector_store %arg6[%c0_9, %c0_10], %22 {strides = array<i32>} : memref<128x16xf32, #tpu.memory_space<vmem>>, vector<128x16xf32>,
    %24 = tpu.iota {dimensions = array<i32: 1>} : vector<2x128xi32>
    %25 = tpu.iota {dimensions = array<i32: 0>} : vector<2x128xi32>
    %c0_i32_11 = arith.constant 0 : i32
    %26 = vector.broadcast %c0_i32_11 : i32 to vector<2x128xi32>
    %27 = arith.cmpi eq, %25, %26 : vector<2x128xi32>
    %c8_i32 = arith.constant 8 : i32
    %28 = vector.broadcast %c8_i32 : i32 to vector<2x128xi32>
    %29 = arith.shrsi %24, %28 : vector<2x128xi32>
    %c255_i32 = arith.constant 255 : i32
    %30 = vector.broadcast %c255_i32 : i32 to vector<2x128xi32>
    %31 = arith.andi %24, %30 : vector<2x128xi32>
    %32 = arith.select %27, %29, %31 : vector<2x128xi1>, vector<2x128xi32>
    %33 = arith.sitofp %32 : vector<2x128xi32> to vector<2x128xf32>
    %cst_12 = arith.constant dense<0.000000e+00> : vector<2x128xf32>
    %34 = tpu.matmul %33, %21, %cst_12 {dimension_numbers = #tpu.dot_dimension_numbers<[1], [1], [0], [0], [0, 0, 1, 0], [], []>} : vector<2x128xf32>, vector<128x128xf32>, vector<2x128xf32> -> vector<2x128xf32>
    %35 = vector.extract_strided_slice %34 {offsets = [0, 0], sizes = [1, 128], strides = [1, 1]} : vector<2x128xf32> to vector<1x128xf32>
    %cst_13 = arith.constant 2.560000e+02 : f32
    %36 = vector.broadcast %cst_13 : f32 to vector<1x128xf32>
    %37 = arith.mulf %35, %36 : vector<1x128xf32>
    %38 = vector.extract_strided_slice %34 {offsets = [1, 0], sizes = [1, 128], strides = [1, 1]} : vector<2x128xf32> to vector<1x128xf32>
    %39 = arith.addf %37, %38 : vector<1x128xf32>
    %40 = arith.fptosi %39 : vector<1x128xf32> to vector<1x128xi32>
    %41 = vector.shape_cast %40 : vector<1x128xi32> to vector<1x1x128xi32>
    %c0_14 = arith.constant 0 : index
    %c0_15 = arith.constant 0 : index
    %c0_16 = arith.constant 0 : index
    %42 = vector.load %arg7[%c0_14, %c0_15, %c0_16] : memref<1x1x128xi32, #tpu.memory_space<vmem>>, vector<1x1x128xi32>
    tpu.vector_store %arg7[%c0_14, %c0_15, %c0_16], %41 {strides = array<i32>} : memref<1x1x128xi32, #tpu.memory_space<vmem>>, vector<1x1x128xi32>,
    %c1_i32 = arith.constant 1 : i32
    %43 = arith.muli %arg0, %c1_i32 : i32
    %44 = arith.addi %43, %arg1 : i32
    %c128_i32_17 = arith.constant 128 : i32
    %45 = arith.muli %44, %c128_i32_17 : i32
    %46 = tpu.iota {dimensions = array<i32: 0>} : vector<128x1xi32>
    %47 = vector.broadcast %45 : i32 to vector<128x1xi32>
    %48 = arith.addi %47, %46 : vector<128x1xi32>
    %c0_18 = arith.constant 0 : index
    %49 = memref.load %arg2[%c0_18] : memref<1xi32, #tpu.memory_space<smem>>
    %50 = vector.broadcast %49 : i32 to vector<128x1xi32>
    %51 = arith.cmpi slt, %48, %50 : vector<128x1xi32>
    %52 = arith.extui %51 : vector<128x1xi1> to vector<128x1xi32>
    %53 = arith.sitofp %52 : vector<128x1xi32> to vector<128x1xf32>
    %c0_19 = arith.constant 0 : index
    %c0_20 = arith.constant 0 : index
    %54 = vector.load %arg11[%c0_19, %c0_20] : memref<128x16xf32, #tpu.memory_space<vmem>>, vector<128x16xf32>
    %cst_21 = arith.constant dense<0.000000e+00> : vector<128x16xf32>
    %55 = tpu.matmul %21, %3, %cst_21 {dimension_numbers = #tpu.dot_dimension_numbers<[0], [0], [1], [1], [0, 1, 1, 1], [], []>} : vector<128x128xf32>, vector<128x16xf32>, vector<128x16xf32> -> vector<128x16xf32>
    %56 = arith.addf %54, %55 : vector<128x16xf32>
    %c0_22 = arith.constant 0 : index
    %c0_23 = arith.constant 0 : index
    %57 = vector.load %arg11[%c0_22, %c0_23] : memref<128x16xf32, #tpu.memory_space<vmem>>, vector<128x16xf32>
    tpu.vector_store %arg11[%c0_22, %c0_23], %56 {strides = array<i32>} : memref<128x16xf32, #tpu.memory_space<vmem>>, vector<128x16xf32>,
    %c0_24 = arith.constant 0 : index
    %c0_25 = arith.constant 0 : index
    %58 = vector.load %arg12[%c0_24, %c0_25] : memref<1x128xf32, #tpu.memory_space<vmem>>, vector<1x128xf32>
    %cst_26 = arith.constant dense<0.000000e+00> : vector<1x128xf32>
    %59 = tpu.matmul %53, %21, %cst_26 {dimension_numbers = #tpu.dot_dimension_numbers<[0], [0], [1], [1], [0, 1, 1, 1], [], []>} : vector<128x1xf32>, vector<128x128xf32>, vector<1x128xf32> -> vector<1x128xf32>
    %60 = arith.addf %58, %59 : vector<1x128xf32>
    %c0_27 = arith.constant 0 : index
    %c0_28 = arith.constant 0 : index
    %61 = vector.load %arg12[%c0_27, %c0_28] : memref<1x128xf32, #tpu.memory_space<vmem>>, vector<1x128xf32>
    tpu.vector_store %arg12[%c0_27, %c0_28], %60 {strides = array<i32>} : memref<1x128xf32, #tpu.memory_space<vmem>>, vector<1x128xf32>,
    %62 = arith.subf %22, %3 : vector<128x16xf32>
    %63 = arith.mulf %62, %62 : vector<128x16xf32>
    %cst_29 = arith.constant dense<0.000000e+00> : vector<128xf32>
    %64 = vector.multi_reduction <add>, %63, %cst_29 [1] : vector<128x16xf32> to vector<128xf32>
    %65 = vector.shape_cast %64 : vector<128xf32> to vector<128x1xf32>
    %66 = arith.mulf %65, %53 : vector<128x1xf32>
    %c0_30 = arith.constant 0 : index
    %c0_31 = arith.constant 0 : index
    %67 = vector.load %arg13[%c0_30, %c0_31] : memref<1x1xf32, #tpu.memory_space<vmem>>, vector<1x1xf32>
    %cst_32 = arith.constant dense<0.000000e+00> : vector<1xf32>
    %68 = vector.multi_reduction <add>, %66, %cst_32 [0] : vector<128x1xf32> to vector<1xf32>
    %69 = vector.shape_cast %68 : vector<1xf32> to vector<1x1xf32>
    %70 = arith.addf %67, %69 : vector<1x1xf32>
    %c0_33 = arith.constant 0 : index
    %c0_34 = arith.constant 0 : index
    %71 = vector.load %arg13[%c0_33, %c0_34] : memref<1x1xf32, #tpu.memory_space<vmem>>, vector<1x1xf32>
    tpu.vector_store %arg13[%c0_33, %c0_34], %70 {strides = array<i32>} : memref<1x1xf32, #tpu.memory_space<vmem>>, vector<1x1xf32>,
    %c0_i32_35 = arith.constant 0 : i32
    %72 = arith.cmpi eq, %arg1, %c0_i32_35 : i32
    %73 = arith.extui %72 : i1 to i32
    %c0_i32_36 = arith.constant 0 : i32
    %74 = arith.cmpi ne, %73, %c0_i32_36 : i32
    scf.if %74 {
      %c0_37 = arith.constant 0 : index
      %c0_38 = arith.constant 0 : index
      %75 = vector.load %arg11[%c0_37, %c0_38] : memref<128x16xf32, #tpu.memory_space<vmem>>, vector<128x16xf32>
      %76 = vector.shape_cast %75 : vector<128x16xf32> to vector<1x128x16xf32>
      %c0_39 = arith.constant 0 : index
      %c0_40 = arith.constant 0 : index
      %c0_41 = arith.constant 0 : index
      %77 = vector.load %arg8[%c0_39, %c0_40, %c0_41] : memref<1x128x16xf32, #tpu.memory_space<vmem>>, vector<1x128x16xf32>
      tpu.vector_store %arg8[%c0_39, %c0_40, %c0_41], %76 {strides = array<i32>} : memref<1x128x16xf32, #tpu.memory_space<vmem>>, vector<1x128x16xf32>,
      %c0_42 = arith.constant 0 : index
      %c0_43 = arith.constant 0 : index
      %78 = vector.load %arg12[%c0_42, %c0_43] : memref<1x128xf32, #tpu.memory_space<vmem>>, vector<1x128xf32>
      %79 = vector.shape_cast %78 : vector<1x128xf32> to vector<1x1x128xf32>
      %c0_44 = arith.constant 0 : index
      %c0_45 = arith.constant 0 : index
      %c0_46 = arith.constant 0 : index
      %80 = vector.load %arg9[%c0_44, %c0_45, %c0_46] : memref<1x1x128xf32, #tpu.memory_space<vmem>>, vector<1x1x128xf32>
      tpu.vector_store %arg9[%c0_44, %c0_45, %c0_46], %79 {strides = array<i32>} : memref<1x1x128xf32, #tpu.memory_space<vmem>>, vector<1x1x128xf32>,
      %c0_47 = arith.constant 0 : index
      %c0_48 = arith.constant 0 : index
      %81 = vector.load %arg13[%c0_47, %c0_48] : memref<1x1xf32, #tpu.memory_space<vmem>>, vector<1x1xf32>
      %82 = vector.shape_cast %81 : vector<1x1xf32> to vector<1x1x1xf32>
      %c0_49 = arith.constant 0 : index
      %c0_50 = arith.constant 0 : index
      %c0_51 = arith.constant 0 : index
      %83 = vector.load %arg10[%c0_49, %c0_50, %c0_51] : memref<1x1x1xf32, #tpu.memory_space<vmem>>, vector<1x1x1xf32>
      tpu.vector_store %arg10[%c0_49, %c0_50, %c0_51], %82 {strides = array<i32>} : memref<1x1x1xf32, #tpu.memory_space<vmem>>, vector<1x1x1xf32>,
    } else {
    }
    return
  }
  func.func @transform_0(%arg0: i32, %arg1: i32, %arg2: memref<1xi32, #tpu.memory_space<smem>>) -> (i32, i32) {
    %c1_i32 = arith.constant 1 : i32
    %0 = arith.muli %arg0, %c1_i32 : i32
    %1 = arith.addi %0, %arg1 : i32
    %c0_i32 = arith.constant 0 : i32
    %c0_i32_0 = arith.constant 0 : i32
    return %1, %c0_i32 : i32, i32
  }
  func.func @transform_1(%arg0: i32, %arg1: i32, %arg2: memref<1xi32, #tpu.memory_space<smem>>) -> (i32, i32) {
    %c0_i32 = arith.constant 0 : i32
    %c0_i32_0 = arith.constant 0 : i32
    %c0_i32_1 = arith.constant 0 : i32
    return %c0_i32, %c0_i32_0 : i32, i32
  }
  func.func @transform_2(%arg0: i32, %arg1: i32, %arg2: memref<1xi32, #tpu.memory_space<smem>>) -> (i32, i32) {
    %c0_i32 = arith.constant 0 : i32
    %c0_i32_0 = arith.constant 0 : i32
    %c0_i32_1 = arith.constant 0 : i32
    return %c0_i32, %c0_i32_0 : i32, i32
  }
  func.func @transform_3(%arg0: i32, %arg1: i32, %arg2: memref<1xi32, #tpu.memory_space<smem>>) -> (i32, i32) {
    %c1_i32 = arith.constant 1 : i32
    %0 = arith.muli %arg0, %c1_i32 : i32
    %1 = arith.addi %0, %arg1 : i32
    %c0_i32 = arith.constant 0 : i32
    %c0_i32_0 = arith.constant 0 : i32
    return %1, %c0_i32 : i32, i32
  }
  func.func @transform_4(%arg0: i32, %arg1: i32, %arg2: memref<1xi32, #tpu.memory_space<smem>>) -> (i32, i32, i32) {
    %c1_i32 = arith.constant 1 : i32
    %0 = arith.muli %arg0, %c1_i32 : i32
    %1 = arith.addi %0, %arg1 : i32
    %c0_i32 = arith.constant 0 : i32
    %c0_i32_0 = arith.constant 0 : i32
    %c0_i32_1 = arith.constant 0 : i32
    return %1, %c0_i32, %c0_i32_0 : i32, i32, i32
  }
  func.func @transform_5(%arg0: i32, %arg1: i32, %arg2: memref<1xi32, #tpu.memory_space<smem>>) -> (i32, i32, i32) {
    %c0_i32 = arith.constant 0 : i32
    %c0_i32_0 = arith.constant 0 : i32
    %c0_i32_1 = arith.constant 0 : i32
    return %arg0, %c0_i32, %c0_i32_0 : i32, i32, i32
  }
  func.func @transform_6(%arg0: i32, %arg1: i32, %arg2: memref<1xi32, #tpu.memory_space<smem>>) -> (i32, i32, i32) {
    %c0_i32 = arith.constant 0 : i32
    %c0_i32_0 = arith.constant 0 : i32
    %c0_i32_1 = arith.constant 0 : i32
    return %arg0, %c0_i32, %c0_i32_0 : i32, i32, i32
  }
  func.func @transform_7(%arg0: i32, %arg1: i32, %arg2: memref<1xi32, #tpu.memory_space<smem>>) -> (i32, i32, i32) {
    %c0_i32 = arith.constant 0 : i32
    %c0_i32_0 = arith.constant 0 : i32
    %c0_i32_1 = arith.constant 0 : i32
    return %arg0, %c0_i32, %c0_i32_0 : i32, i32, i32
  }
}

</mosaic_0001>

<bundles_post_ra>
// kernel: tpu_custom_call.1
= control target key start
LH: loop header
LB: loop body
LE: loop exit
PB: predicated region body
PF: predicated region fallthrough
CT: control target
= control target key end

     0   :  { %s3963_s0 = inlined_call_operand.<no memory space> [shape: s32[1], index: 0, kind: input, shape index: {}]   ;;  %s3964_s1 = inlined_call_operand.vmem [shape: f32[256,16], index: 1, kind: input, shape index: {}]   ;;  %s3965_s2 = inlined_call_operand.vmem [shape: f32[128,16], index: 2, kind: input, shape index: {}]   ;;  %s3966_s3 = inlined_call_operand.vmem [shape: f32[1,128], index: 3, kind: input, shape index: {}]   ;;  %s3967_s4 = inlined_call_operand.vmem [shape: f32[256,16], index: 4, kind: output, shape index: {0}]   ;;  %s3968_s5 = inlined_call_operand.hbm [shape: s32[2,1,128], index: 5, kind: output, shape index: {1}]   ;;  %s3969_s6 = inlined_call_operand.vmem [shape: f32[2,128,16], index: 6, kind: output, shape index: {2}]   ;;  %s3970_s7 = inlined_call_operand.hbm [shape: f32[2,1,128], index: 7, kind: output, shape index: {3}]   ;;  %s3971_s8 = inlined_call_operand.vmem [shape: f32[2,1,1], index: 8, kind: output, shape index: {4}]  }
   0x1   :  { %3975 = sst [smem:[#allocation13_spill]] %s3964_s1 }
   0x2   :  { %3976 = sst [smem:[#allocation14_spill]] %s3965_s2 }
   0x3   :  { %14 = sst [smem:[#allocation6]] %s3963_s0 }
   0x4   :  { %15 = vsyncpa [#allocation8], 0 }
   0x5   :  { %17 = vsyncpa [#allocation8 + $0x1], 0 }
   0x6   :  { %18 = vsyncpa [#allocation10], 0 }
   0x7   :  { %20 = vsyncpa [#allocation10 + $0x1], 0  ;;  %s2786_s29 = smov 0   ;;  %s2788_s30 = smov 0  }
   0x8   :  { %s2790_s9 = smov 0   ;;  %s2792_s10 = smov 0  }
   0x9   :  { %s2794_s11 = smov 0   ;;  %s2796_s12 = smov 0  }
   0xa LB: > { %s2046_s0 = sadd.s32 4294967295, %s2731_s12   ;;  %s2047_s13 = sadd.s32 4294967294, %s2731_s12   ;;  %s2731_s12 = sphi %s2796_s12, %s26_s12   ;;  %s2727_s11 = sphi %s2794_s11, %s4048_s11   ;;  %s2723_s10 = sphi %s2792_s10, %s4047_s10   ;;  %s2719_s9 = sphi %s2790_s9, %s4046_s9   ;;  %s2715_s30 = sphi %s2788_s30, %s4045_s30   ;;  %s2711_s29 = sphi %s2786_s29, %s4044_s29  }
   0xb   : > { %s38_s14 = sadd.s32 1, %s2727_s11  ;;  %s145_s15 = sadd.s32 1, %s2719_s9 }
   0xc   : > { %p40_p0 = scmp.ge.s32.totalorder %s38_s14, 2  ;;  %p155_p1 = scmp.ne.s32.totalorder %s2719_s9, %s2715_s30 }
   0xd   : > { %p156_p2 = scmp.eq.s32.totalorder %s2046_s0, 1  ;;  %p161_p3 = scmp.ne.s32.totalorder %s2715_s30, %s2711_s29 }
   0xe   : > { %s4050_s14 = smov (%p40_p0, %s38_s14), 0  ;;  %p162_p5 = scmp.eq.s32.totalorder %s2047_s13, 1 }
   0xf   : > { %p2826_p4 = por %p156_p2, %p155_p1  ;;  %s142_s17 = ssub.s32 %s2727_s11, %s4050_s14 }
  0x10   : > { %p2050_p6 = scmp.ge.s32.totalorder %s2731_s12, 1  ;;  %p143_p7 = scmp.eq.s32.totalorder %s142_s17, 0 }
  0x11   : > { %p2833_p8 = por %p162_p5, %p161_p3  ;;  %p275_p9 = scmp.lt.s32.totalorder %s2731_s12, 3 }
  0x12   : > { %s2839_s19 = scalar_select %p143_p7, %s2719_s9, %s145_s15  }
  0x13   : > { %p276_p10 = pnand %p2050_p6, %p275_p9 }
  0x14   : > { %s3979_s2 = sld [smem:[#allocation14_spill]] (!%p276_p10)  ;;  %s2848_s24 = sshll.u32 (!%p276_p10), %s2723_s10, 4 }
  0x15   : > { %279 = sbr.rel (%p276_p10) target bundleno = 1123 (0x463), region = 32  ;;  %p327_p11 = scmp.lt.s32.totalorder (!%p276_p10), %s2848_s24, 31 }
  0x16   : > { %s3980_s1 = sld [smem:[#allocation13_spill]] (!%p276_p10)  ;;  %s2138_s21 = sshll.u32 (!%p276_p10), %s2723_s10, 7 }
  0x17   : > { %s1288_s17 = sld [smem:[#allocation6]] (!%p276_p10)  ;;  %s1863_s13 = scalar_lea.hbm (!%p276_p10), %s3968_s5, %s2848_s24 }
  0x1a   : > { %vm3972_vm0 = vcmask 130048   ;;  %v405_v0 = vld [vmem:[%s3979_s2 + $0x78] sm:$0xff]  ;;  %v404_v1 = vld [vmem:[%s3979_s2 + $0x70] sm:$0xff]  ;;  %s2855_s25 = scalar_select %p327_p11, %s2848_s24, 31  ;;  %v403_v2 = vld [vmem:[%s3979_s2 + $0x68] sm:$0xff] }
  0x1b   : > { %2306 = vmatprep.subr.msk.mxu0 %vm3972_vm0, %v405_v0  ;;  %2362 = vmatprep.subr.mxu1 %v405_v0  ;;  %v402_v3 = vld [vmem:[%s3979_s2 + $0x60] sm:$0xff]  ;;  %v401_v5 = vld [vmem:[%s3979_s2 + $0x58] sm:$0xff]  ;;  %v400_v6 = vld [vmem:[%s3979_s2 + $0x50] sm:$0xff] }
  0x1c   : > { %2307 = vmatpush3.xpose.msk.msra.mxu0 %vm3972_vm0, %v405_v0  ;;  %2363 = vmatpush3.msra.mxu1 %v405_v0  ;;  %s2052_s28 = sshll.u32 %s2855_s25, 3  ;;  %v399_v7 = vld [vmem:[%s3979_s2 + $0x48] sm:$0xff]  ;;  %v398_v8 = vld [vmem:[%s3979_s2 + $0x40] sm:$0xff]  ;;  %v397_v9 = vld [vmem:[%s3979_s2 + $0x38] sm:$0xff]  ;;  %s3817_s25 = sand.u32 1, %s2715_s30  }
  0x1d   : > { %2308 = vmatprep.subr.msk.mxu0 %vm3972_vm0, %v404_v1  ;;  %2364 = vmatprep.subr.mxu1 %v404_v1  ;;  %s2870_s20 = scalar_lea.vmem %s3980_s1, %s2052_s28  ;;  %v396_v10 = vld [vmem:[%s3979_s2 + $0x30] sm:$0xff]  ;;  %v395_v11 = vld [vmem:[%s3979_s2 + $0x28] sm:$0xff]  ;;  %v394_v12 = vld [vmem:[%s3979_s2 + $0x20] sm:$0xff]  ;;  %s3748_s26 = scalar_lea.vmem %s3967_s4, %s2052_s28 }
  0x1e   : > { %2365 = vmatpush3.msra.mxu1 %v404_v1  ;;  %v2874_v4 = vld [vmem:[%s2870_s20] sm:$0xff]  ;;  %v393_v13 = vld [vmem:[%s3979_s2 + $0x18] sm:$0xff]  ;;  %v392_v14 = vld [vmem:[%s3979_s2 + $0x10] sm:$0xff]  ;;  %s306_s28 = scalar_lea.vmem [#allocation7], %s3817_s25  ;;  %s1835_s15 = scalar_lea.sflag [#allocation8], %s3817_s25 }
  0x1f   : > { %2366 = vmatprep.subr.mxu1 %v403_v2  ;;  %2338 = vmatprep.mubr.msk.f32.mxu0 %vm3972_vm0, %v2874_v4  ;;  %v391_v15 = vld [vmem:[%s3979_s2 + $0x8] sm:$0xff]  ;;  %v390_v16 = vld [vmem:[%s3979_s2] sm:$0xff]  ;;  %v389_v18 = vld [vmem:[%s2870_s20 + $0x78] sm:$0xff] }
  0x20   : > { %2309 = vmatpush3.xpose.msk.msra.mxu0 %vm3972_vm0, %v404_v1  ;;  %2367 = vmatpush3.msra.mxu1 %v403_v2  ;;  %v375_v17 = vld [vmem:[%s2870_s20 + $0x8] sm:$0xff]  ;;  %v376_v19 = vld [vmem:[%s2870_s20 + $0x10] sm:$0xff]  ;;  %v377_v20 = vld [vmem:[%s2870_s20 + $0x18] sm:$0xff]  ;;  %v703_v1 = vlaneseq }
  0x21   : > { %2310 = vmatprep.subr.msk.mxu0 %vm3972_vm0, %v403_v2  ;;  %2368 = vmatprep.subr.mxu1 %v402_v3  ;;  %v388_v21 = vld [vmem:[%s2870_s20 + $0x70] sm:$0xff]  ;;  %v378_v22 = vld [vmem:[%s2870_s20 + $0x20] sm:$0xff]  ;;  %v387_v23 = vld [vmem:[%s2870_s20 + $0x68] sm:$0xff] }
  0x22   : > { %2369 = vmatpush3.msra.mxu1 %v402_v3  ;;  %v379_v24 = vld [vmem:[%s2870_s20 + $0x28] sm:$0xff]  ;;  %v386_v25 = vld [vmem:[%s2870_s20 + $0x60] sm:$0xff]  ;;  %v380_v26 = vld [vmem:[%s2870_s20 + $0x30] sm:$0xff] }
  0x23   : > { %2370 = vmatprep.subr.mxu1 %v401_v5  ;;  %v385_v27 = vld [vmem:[%s2870_s20 + $0x58] sm:$0xff]  ;;  %v384_v29 = vld [vmem:[%s2870_s20 + $0x50] sm:$0xff]  ;;  %v382_v30 = vld [vmem:[%s2870_s20 + $0x40] sm:$0xff] }
  0x24   : > { %2311 = vmatpush3.xpose.msk.msra.mxu0 %vm3972_vm0, %v403_v2  ;;  %2371 = vmatpush3.msra.mxu1 %v401_v5  ;;  %v381_v28 = vld [vmem:[%s2870_s20 + $0x38] sm:$0xff]  ;;  %v383_v31 = vld [vmem:[%s2870_s20 + $0x48] sm:$0xff]  ;;  %v2089_v33 = vld [vmem:[%s3966_s3] ss:$0 sm:$0xff]  ;;  %v3010_v2 = vand.u32 127, %v703_v1 }
  0x25   : > { %2312 = vmatprep.subr.msk.mxu0 %vm3972_vm0, %v402_v3  ;;  %2372 = vmatprep.subr.mxu1 %v400_v6 }
  0x26   : > { %2373 = vmatpush3.msra.mxu1 %v400_v6 }
  0x27   : > { %2374 = vmatprep.subr.mxu1 %v399_v7 }
  0x28   : > { %2313 = vmatpush3.xpose.msk.msra.mxu0 %vm3972_vm0, %v402_v3  ;;  %2375 = vmatpush3.msra.mxu1 %v399_v7 }
  0x29   : > { %2314 = vmatprep.subr.msk.mxu0 %vm3972_vm0, %v401_v5  ;;  %2376 = vmatprep.subr.mxu1 %v398_v8 }
  0x2a   : > { %2377 = vmatpush3.msra.mxu1 %v398_v8 }
  0x2b   : > { %2378 = vmatprep.subr.mxu1 %v397_v9 }
  0x2c   : > { %2315 = vmatpush3.xpose.msk.msra.mxu0 %vm3972_vm0, %v401_v5  ;;  %2379 = vmatpush3.msra.mxu1 %v397_v9 }
  0x2d   : > { %2316 = vmatprep.subr.msk.mxu0 %vm3972_vm0, %v400_v6  ;;  %2380 = vmatprep.subr.mxu1 %v396_v10 }
  0x2e   : > { %2381 = vmatpush3.msra.mxu1 %v396_v10 }
  0x2f   : > { %2382 = vmatprep.subr.mxu1 %v395_v11 }
  0x30   : > { %2317 = vmatpush3.xpose.msk.msra.mxu0 %vm3972_vm0, %v400_v6  ;;  %2383 = vmatpush3.msra.mxu1 %v395_v11 }
  0x31   : > { %2318 = vmatprep.subr.msk.mxu0 %vm3972_vm0, %v399_v7  ;;  %2384 = vmatprep.subr.mxu1 %v394_v12 }
  0x32   : > { %2385 = vmatpush3.msra.mxu1 %v394_v12 }
  0x33   : > { %2386 = vmatprep.subr.mxu1 %v393_v13 }
  0x34   : > { %2319 = vmatpush3.xpose.msk.msra.mxu0 %vm3972_vm0, %v399_v7  ;;  %2387 = vmatpush3.msra.mxu1 %v393_v13 }
  0x35   : > { %2320 = vmatprep.subr.msk.mxu0 %vm3972_vm0, %v398_v8  ;;  %2388 = vmatprep.subr.mxu1 %v392_v14 }
  0x36   : > { %2389 = vmatpush3.msra.mxu1 %v392_v14 }
  0x37   : > { %2390 = vmatprep.subr.mxu1 %v391_v15 }
  0x38   : > { %2321 = vmatpush3.xpose.msk.msra.mxu0 %vm3972_vm0, %v398_v8  ;;  %2391 = vmatpush3.msra.mxu1 %v391_v15 }
  0x39   : > { %2322 = vmatprep.subr.msk.mxu0 %vm3972_vm0, %v397_v9  ;;  %2392 = vmatprep.subr.mxu1 %v390_v16 }
  0x3a   : > { %2393 = vmatpush3.msra.mxu1 %v390_v16 }
  0x3c   : > { %2323 = vmatpush3.xpose.msk.msra.mxu0 %vm3972_vm0, %v397_v9 }
  0x3d   : > { %2324 = vmatprep.subr.msk.mxu0 %vm3972_vm0, %v396_v10 }
  0x40   : > { %2325 = vmatpush3.xpose.msk.msra.mxu0 %vm3972_vm0, %v396_v10 }
  0x41   : > { %2326 = vmatprep.subr.msk.mxu0 %vm3972_vm0, %v395_v11 }
  0x44   : > { %2327 = vmatpush3.xpose.msk.msra.mxu0 %vm3972_vm0, %v395_v11 }
  0x45   : > { %2328 = vmatprep.subr.msk.mxu0 %vm3972_vm0, %v394_v12 }
  0x48   : > { %2329 = vmatpush3.xpose.msk.msra.mxu0 %vm3972_vm0, %v394_v12 }
  0x49   : > { %2330 = vmatprep.subr.msk.mxu0 %vm3972_vm0, %v393_v13 }
  0x4c   : > { %2331 = vmatpush3.xpose.msk.msra.mxu0 %vm3972_vm0, %v393_v13 }
  0x4d   : > { %2332 = vmatprep.subr.msk.mxu0 %vm3972_vm0, %v392_v14 }
  0x50   : > { %2333 = vmatpush3.xpose.msk.msra.mxu0 %vm3972_vm0, %v392_v14 }
  0x51   : > { %2334 = vmatprep.subr.msk.mxu0 %vm3972_vm0, %v391_v15 }
  0x54   : > { %2335 = vmatpush3.xpose.msk.msra.mxu0 %vm3972_vm0, %v391_v15 }
  0x55   : > { %2336 = vmatprep.subr.msk.mxu0 %vm3972_vm0, %v390_v16 }
  0x58   : > { %2337 = vmatpush3.xpose.msk.msra.mxu0 %vm3972_vm0, %v390_v16 }
  0x59   : > { %2453 = vmatprep.subr.mxu0 %v389_v18 }
  0x5b   : > { %2339 = vmatmul.mubr.msk.f32.vlgmr.msra.gmra.mxu0 %vm3972_vm0, %v375_v17 }
  0x5c   : > { %2341 = vmatprep.mubr.msk.f32.mxu0 %vm3972_vm0, %v376_v19  ;;  %2454 = vmatpush3.msra.mxu0 %v389_v18 }
  0x5d   : > { %2455 = vmatprep.subr.mxu0 %v388_v21 }
  0x5e   : > { %2456 = vmatpush3.msra.mxu0 %v388_v21 }
  0x5f   : > { %2342 = vmatmul.mubr.msk.f32.gmra.mxu0 %vm3972_vm0, %v377_v20  ;;  %2457 = vmatprep.subr.mxu0 %v387_v23 }
  0x60   : > { %2344 = vmatprep.mubr.msk.f32.mxu0 %vm3972_vm0, %v378_v22  ;;  %2458 = vmatpush3.msra.mxu0 %v387_v23 }
  0x61   : > { %2459 = vmatprep.subr.mxu0 %v386_v25 }
  0x62   : > { %2460 = vmatpush3.msra.mxu0 %v386_v25 }
  0x63   : > { %2345 = vmatmul.mubr.msk.f32.gmra.mxu0 %vm3972_vm0, %v379_v24  ;;  %2461 = vmatprep.subr.mxu0 %v385_v27 }
  0x64   : > { %2347 = vmatprep.mubr.msk.f32.mxu0 %vm3972_vm0, %v380_v26  ;;  %2462 = vmatpush3.msra.mxu0 %v385_v27 }
  0x65   : > { %2463 = vmatprep.subr.mxu0 %v384_v29 }
  0x66   : > { %2464 = vmatpush3.msra.mxu0 %v384_v29 }
  0x67   : > { %2348 = vmatmul.mubr.msk.f32.gmra.mxu0 %vm3972_vm0, %v381_v28  ;;  %2465 = vmatprep.subr.mxu0 %v383_v31 }
  0x68   : > { %2350 = vmatprep.mubr.msk.f32.mxu0 %vm3972_vm0, %v382_v30  ;;  %2466 = vmatpush3.msra.mxu0 %v383_v31 }
  0x69   : > { %2467 = vmatprep.subr.mxu0 %v382_v30 }
  0x6a   : > { %2468 = vmatpush3.msra.mxu0 %v382_v30 }
  0x6b   : > { %2351 = vmatmul.mubr.msk.f32.gmra.mxu0 %vm3972_vm0, %v383_v31  ;;  %2469 = vmatprep.subr.mxu0 %v381_v28 }
  0x6c   : > { %2353 = vmatprep.mubr.msk.f32.mxu0 %vm3972_vm0, %v384_v29  ;;  %2470 = vmatpush3.msra.mxu0 %v381_v28 }
  0x6d   : > { %2471 = vmatprep.subr.mxu0 %v380_v26 }
  0x6e   : > { %2472 = vmatpush3.msra.mxu0 %v380_v26 }
  0x6f   : > { %2354 = vmatmul.mubr.msk.f32.gmra.mxu0 %vm3972_vm0, %v385_v27  ;;  %2473 = vmatprep.subr.mxu0 %v379_v24 }
  0x70   : > { %2356 = vmatprep.mubr.msk.f32.mxu0 %vm3972_vm0, %v386_v25  ;;  %2474 = vmatpush3.msra.mxu0 %v379_v24 }
  0x71   : > { %2475 = vmatprep.subr.mxu0 %v378_v22 }
  0x72   : > { %2476 = vmatpush3.msra.mxu0 %v378_v22 }
  0x73   : > { %2357 = vmatmul.mubr.msk.f32.gmra.mxu0 %vm3972_vm0, %v387_v23  ;;  %2477 = vmatprep.subr.mxu0 %v377_v20 }
  0x74   : > { %2359 = vmatprep.mubr.msk.f32.mxu0 %vm3972_vm0, %v388_v21  ;;  %2478 = vmatpush3.msra.mxu0 %v377_v20 }
  0x75   : > { %2479 = vmatprep.subr.mxu0 %v376_v19 }
  0x76   : > { %2480 = vmatpush3.msra.mxu0 %v376_v19 }
  0x77   : > { %2360 = vmatmul.mubr.msk.f32.gmra.mxu0 %vm3972_vm0, %v389_v18  ;;  %2481 = vmatprep.subr.mxu0 %v375_v17 }
  0x78   : > { %2482 = vmatpush3.msra.mxu0 %v375_v17 }
  0x79   : > { %2483 = vmatprep.subr.mxu0 %v2874_v4 }
  0x7a   : > { %2484 = vmatpush3.msra.mxu0 %v2874_v4 }
 0x11b   : > { %v2340_v32 = vpop.f32.mrf.mxu0 }
 0x11c   : > { %v656_v38 = vsub.f32 %v2340_v32, %v2089_v33 }
 0x11d   : > { %v570_v34 = vpop.f32.mrf.mxu0 }
 0x11e   : > { %v655_v35 = vsub.f32 %v570_v34, %v2089_v33 }
 0x11f   : > { %v2343_v36 = vpop.f32.mrf.mxu0 }
 0x120   : > { %671 = vmax.xlane.f32.xlu0 %v655_v35  ;;  %v658_v42 = vsub.f32 %v2343_v36, %v2089_v33 }
 0x121   : > { %v580_v37 = vpop.f32.mrf.mxu0 }
 0x122   : > { %v657_v39 = vsub.f32 %v580_v37, %v2089_v33 }
 0x123   : > { %v2346_v40 = vpop.f32.mrf.mxu0 }
 0x124   : > { %673 = vmax.xlane.f32.xlu0 %v656_v38  ;;  %675 = vmax.xlane.f32.xlu1 %v657_v39  ;;  %v2976_v46 = vsub.f32 %v2346_v40, %v2089_v33 }
 0x125   : > { %v590_v41 = vpop.f32.mrf.mxu0 }
 0x126   : > { %v659_v43 = vsub.f32 %v590_v41, %v2089_v33 }
 0x127   : > { %v2349_v44 = vpop.f32.mrf.mxu0 }
 0x128   : > { %677 = vmax.xlane.f32.xlu1 %v658_v42  ;;  %679 = vmax.xlane.f32.xlu0 %v659_v43  ;;  %v2982_v50 = vsub.f32 %v2349_v44, %v2089_v33 }
 0x129   : > { %v600_v45 = vpop.f32.mrf.mxu0 }
 0x12a   : > { %v2978_v47 = vsub.f32 %v600_v45, %v2089_v33 }
 0x12b   : > { %v2352_v48 = vpop.f32.mrf.mxu0 }
 0x12c   : > { %681 = vmax.xlane.f32.xlu1 %v2976_v46  ;;  %683 = vmax.xlane.f32.xlu0 %v2978_v47  ;;  %v2988_v54 = vsub.f32 %v2352_v48, %v2089_v33 }
 0x12d   : > { %v610_v49 = vpop.f32.mrf.mxu0 }
 0x12e   : > { %v2984_v51 = vsub.f32 %v610_v49, %v2089_v33 }
 0x12f   : > { %v2355_v52 = vpop.f32.mrf.mxu0 }
 0x130   : > { %685 = vmax.xlane.f32.xlu1 %v2982_v50  ;;  %687 = vmax.xlane.f32.xlu0 %v2984_v51  ;;  %v2994_v58 = vsub.f32 %v2355_v52, %v2089_v33 }
 0x131   : > { %v620_v53 = vpop.f32.mrf.mxu0 }
 0x132   : > { %v2990_v55 = vsub.f32 %v620_v53, %v2089_v33 }
 0x133   : > { %v2358_v56 = vpop.f32.mrf.mxu0 }
 0x134   : > { %689 = vmax.xlane.f32.xlu1 %v2988_v54  ;;  %691 = vmax.xlane.f32.xlu0 %v2990_v55  ;;  %v3000_v62 = vsub.f32 %v2358_v56, %v2089_v33 }
 0x135   : > { %v630_v57 = vpop.f32.mrf.mxu0 }
 0x136   : > { %v2996_v59 = vsub.f32 %v630_v57, %v2089_v33 }
 0x137   : > { %v2361_v60 = vpop.f32.mrf.mxu0 }
 0x138   : > { %693 = vmax.xlane.f32.xlu1 %v2994_v58  ;;  %695 = vmax.xlane.f32.xlu0 %v2996_v59  ;;  %v3006_v0 = vsub.f32 %v2361_v60, %v2089_v33 }
 0x139   : > { %v640_v61 = vpop.f32.mrf.mxu0 }
 0x13a   : > { %v3002_v63 = vsub.f32 %v640_v61, %v2089_v33 }
 0x13c   : > { %697 = vmax.xlane.f32.xlu1 %v3000_v62  ;;  %699 = vmax.xlane.f32.xlu0 %v3002_v63 }
 0x140   : > { %701 = vmax.xlane.f32.xlu1 %v3006_v0 }
 0x1a9   : > { %v672_v3 = vpop.xlane.xlu0 %671 }
 0x1aa   : > { %vm705_vm1 = vcmp.eq.f32.partialorder %v655_v35, %v672_v3 }
 0x1ab   : > { %v3013_v4 = vsel %vm705_vm1, %v3010_v2, 128 }
 0x1ac   : > { %v738_v5 = vshra.s32 %v3013_v4, 16 }
 0x1ad   : > { %v674_v6 = vpop.xlane.xlu0 %673  ;;  %v676_v7 = vpop.xlane.xlu1 %675 }
 0x1ae   : > { %vm706_vm2 = vcmp.eq.f32.partialorder %v656_v38, %v674_v6  ;;  %vm707_vm3 = vcmp.eq.f32.partialorder %v657_v39, %v676_v7  ;;  %v3016_v8 = vcvt.s32.f32 %v738_v5  ;;  %v737_v7 = vand.u32 65535, %v3013_v4 }
 0x1af   : > { %v3019_v9 = vsel %vm706_vm2, %v3010_v2, 128  ;;  %v3022_v10 = vsel %vm707_vm3, %v3010_v2, 128 }
 0x1b0   : > { %741 = vmin.xlane.f32.xlu0 %v3016_v8  ;;  %v752_v11 = vshra.s32 %v3019_v9, 16  ;;  %v766_v12 = vshra.s32 %v3022_v10, 16 }
 0x1b1   : > { %v678_v13 = vpop.xlane.xlu1 %677  ;;  %v680_v14 = vpop.xlane.xlu0 %679 }
 0x1b2   : > { %vm708_vm4 = vcmp.eq.f32.partialorder %v658_v42, %v678_v13  ;;  %vm709_vm5 = vcmp.eq.f32.partialorder %v659_v43, %v680_v14  ;;  %v3027_v15 = vcvt.s32.f32 %v752_v11  ;;  %v3029_v16 = vcvt.s32.f32 %v766_v12 }
 0x1b3   : > { %v3032_v17 = vsel %vm708_vm4, %v3010_v2, 128  ;;  %v3035_v18 = vsel %vm709_vm5, %v3010_v2, 128  ;;  %v765_v11 = vand.u32 65535, %v3022_v10  ;;  %v739_v13 = vcvt.s32.f32 %v737_v7 }
 0x1b4   : > { %755 = vmin.xlane.f32.xlu1 %v3027_v15  ;;  %769 = vmin.xlane.f32.xlu0 %v3029_v16  ;;  %v780_v19 = vshra.s32 %v3032_v17, 16  ;;  %v794_v20 = vshra.s32 %v3035_v18, 16 }
 0x1b5   : > { %v682_v21 = vpop.xlane.xlu1 %681  ;;  %v684_v22 = vpop.xlane.xlu0 %683 }
 0x1b6   : > { %vm710_vm6 = vcmp.eq.f32.partialorder %v2976_v46, %v682_v21  ;;  %vm711_vm7 = vcmp.eq.f32.partialorder %v2978_v47, %v684_v22  ;;  %v3043_v23 = vcvt.s32.f32 %v780_v19  ;;  %v3045_v24 = vcvt.s32.f32 %v794_v20 }
 0x1b7   : > { %v3048_v25 = vsel %vm710_vm6, %v3010_v2, 128  ;;  %v3051_v26 = vsel %vm711_vm7, %v3010_v2, 128  ;;  %v779_v19 = vand.u32 65535, %v3032_v17  ;;  %v793_v20 = vand.u32 65535, %v3035_v18 }
 0x1b8   : > { %783 = vmin.xlane.f32.xlu1 %v3043_v23  ;;  %797 = vmin.xlane.f32.xlu0 %v3045_v24  ;;  %v808_v27 = vshra.s32 %v3048_v25, 16  ;;  %v822_v28 = vshra.s32 %v3051_v26, 16  ;;  %v807_v17 = vand.u32 65535, %v3048_v25  ;;  %v821_v18 = vand.u32 65535, %v3051_v26 }
 0x1b9   : > { %v686_v29 = vpop.xlane.xlu1 %685  ;;  %v688_v30 = vpop.xlane.xlu0 %687 }
 0x1ba   : > { %vm712_vm8 = vcmp.eq.f32.partialorder %v2982_v50, %v686_v29  ;;  %vm713_vm9 = vcmp.eq.f32.partialorder %v2984_v51, %v688_v30  ;;  %v3059_v31 = vcvt.s32.f32 %v808_v27  ;;  %v3061_v32 = vcvt.s32.f32 %v822_v28 }
 0x1bb   : > { %v3064_v33 = vsel %vm712_vm8, %v3010_v2, 128  ;;  %v3067_v34 = vsel %vm713_vm9, %v3010_v2, 128  ;;  %v781_v29 = vcvt.s32.f32 %v779_v19  ;;  %v795_v30 = vcvt.s32.f32 %v793_v20 }
 0x1bc   : > { %811 = vmin.xlane.f32.xlu1 %v3059_v31  ;;  %825 = vmin.xlane.f32.xlu0 %v3061_v32  ;;  %v836_v35 = vshra.s32 %v3064_v33, 16  ;;  %v850_v36 = vshra.s32 %v3067_v34, 16  ;;  %v835_v25 = vand.u32 65535, %v3064_v33  ;;  %v849_v26 = vand.u32 65535, %v3067_v34 }
 0x1bd   : > { %v690_v37 = vpop.xlane.xlu1 %689  ;;  %v692_v38 = vpop.xlane.xlu0 %691  ;;  %v3251_v20 = vshrl.u32 %v703_v1, 7 }
 0x1be   : > { %vm714_vm10 = vcmp.eq.f32.partialorder %v2988_v54, %v690_v37  ;;  %vm715_vm11 = vcmp.eq.f32.partialorder %v2990_v55, %v692_v38  ;;  %v3075_v39 = vcvt.s32.f32 %v836_v35  ;;  %v3077_v40 = vcvt.s32.f32 %v850_v36 }
 0x1bf   : > { %v3080_v41 = vsel %vm714_vm10, %v3010_v2, 128  ;;  %v3083_v42 = vsel %vm715_vm11, %v3010_v2, 128  ;;  %v809_v37 = vcvt.s32.f32 %v807_v17  ;;  %v823_v38 = vcvt.s32.f32 %v821_v18 }
 0x1c0   : > { %839 = vmin.xlane.f32.xlu1 %v3075_v39  ;;  %853 = vmin.xlane.f32.xlu0 %v3077_v40  ;;  %v864_v43 = vshra.s32 %v3080_v41, 16  ;;  %v878_v44 = vshra.s32 %v3083_v42, 16  ;;  %v863_v33 = vand.u32 65535, %v3080_v41  ;;  %v877_v34 = vand.u32 65535, %v3083_v42 }
 0x1c1   : > { %v694_v45 = vpop.xlane.xlu1 %693  ;;  %v696_v46 = vpop.xlane.xlu0 %695  ;;  %v1258_v18 = vadd.s32 24, %v3251_v20 }
 0x1c2   : > { %vm716_vm12 = vcmp.eq.f32.partialorder %v2994_v58, %v694_v45  ;;  %vm717_vm13 = vcmp.eq.f32.partialorder %v2996_v59, %v696_v46  ;;  %v3091_v47 = vcvt.s32.f32 %v864_v43  ;;  %v3093_v48 = vcvt.s32.f32 %v878_v44 }
 0x1c3   : > { %v3096_v49 = vsel %vm716_vm12, %v3010_v2, 128  ;;  %v3099_v50 = vsel %vm717_vm13, %v3010_v2, 128  ;;  %v837_v45 = vcvt.s32.f32 %v835_v25  ;;  %v851_v46 = vcvt.s32.f32 %v849_v26 }
 0x1c4   : > { %867 = vmin.xlane.f32.xlu1 %v3091_v47  ;;  %881 = vmin.xlane.f32.xlu0 %v3093_v48  ;;  %v892_v51 = vshra.s32 %v3096_v49, 16  ;;  %v906_v52 = vshra.s32 %v3099_v50, 16  ;;  %v1260_v26 = vadd.s32 40, %v3251_v20 }
 0x1c5   : > { %v698_v53 = vpop.xlane.xlu1 %697  ;;  %v700_v54 = vpop.xlane.xlu0 %699 }
 0x1c6   : > { %vm718_vm14 = vcmp.eq.f32.partialorder %v3000_v62, %v698_v53  ;;  %vm719_vm15 = vcmp.eq.f32.partialorder %v3002_v63, %v700_v54  ;;  %v3107_v55 = vcvt.s32.f32 %v892_v51  ;;  %v3109_v56 = vcvt.s32.f32 %v906_v52 }
 0x1c7   : > { %v3112_v57 = vsel %vm718_vm14, %v3010_v2, 128  ;;  %v3115_v58 = vsel %vm719_vm15, %v3010_v2, 128  ;;  %v2733_v51 = vmov 0.0   ;;  %v865_v52 = vcvt.s32.f32 %v863_v33 }
 0x1c8   : > { %895 = vmin.xlane.f32.xlu1 %v3107_v55  ;;  %909 = vmin.xlane.f32.xlu0 %v3109_v56  ;;  %v920_v59 = vshra.s32 %v3112_v57, 16  ;;  %v934_v60 = vshra.s32 %v3115_v58, 16  ;;  %355 = vst.msk [vmem:[#allocation2] sm:$0xff] %vm3972_vm0, %v2733_v51  ;;  %356 = vst.msk [vmem:[#allocation2 + $0x8] sm:$0xff] %vm3972_vm0, %v2733_v51  ;;  %v879_v53 = vcvt.s32.f32 %v877_v34  ;;  %v1262_v34 = vadd.s32 56, %v3251_v20 }
 0x1c9   : > { %v702_v61 = vpop.xlane.xlu1 %701  ;;  %357 = vst.msk [vmem:[#allocation2 + $0x10] sm:$0xff] %vm3972_vm0, %v2733_v51  ;;  %358 = vst.msk [vmem:[#allocation2 + $0x18] sm:$0xff] %vm3972_vm0, %v2733_v51  ;;  %2418 = vmatprep.subr.mxu1 %v2733_v51  ;;  %2509 = vmatprep.subr.mxu0 %v2733_v51 }
 0x1ca   : > { %vm720_vm1 = vcmp.eq.f32.partialorder %v3006_v0, %v702_v61  ;;  %v3122_v62 = vcvt.s32.f32 %v920_v59  ;;  %v3124_v63 = vcvt.s32.f32 %v934_v60  ;;  %v751_v0 = vand.u32 65535, %v3019_v9  ;;  %359 = vst.msk [vmem:[#allocation2 + $0x20] sm:$0xff] %vm3972_vm0, %v2733_v51  ;;  %360 = vst.msk [vmem:[#allocation2 + $0x28] sm:$0xff] %vm3972_vm0, %v2733_v51 }
 0x1cb   : > { %v3127_v3 = vsel %vm720_vm1, %v3010_v2, 128  ;;  %v767_v9 = vcvt.s32.f32 %v765_v11  ;;  %361 = vst.msk [vmem:[#allocation2 + $0x30] sm:$0xff] %vm3972_vm0, %v2733_v51  ;;  %362 = vst.msk [vmem:[#allocation2 + $0x38] sm:$0xff] %vm3972_vm0, %v2733_v51  ;;  %v933_v59 = vand.u32 65535, %v3115_v58 }
 0x1cc   : > { %923 = vmin.xlane.f32.xlu1 %v3122_v62  ;;  %937 = vmin.xlane.f32.xlu0 %v3124_v63  ;;  %v948_v5 = vshra.s32 %v3127_v3, 16  ;;  %v753_v4 = vcvt.s32.f32 %v751_v0  ;;  %363 = vst.msk [vmem:[#allocation2 + $0x40] sm:$0xff] %vm3972_vm0, %v2733_v51  ;;  %364 = vst.msk [vmem:[#allocation2 + $0x48] sm:$0xff] %vm3972_vm0, %v2733_v51 }
 0x1cd   : > { %365 = vst.msk [vmem:[#allocation2 + $0x50] sm:$0xff] %vm3972_vm0, %v2733_v51  ;;  %366 = vst.msk [vmem:[#allocation2 + $0x58] sm:$0xff] %vm3972_vm0, %v2733_v51 }
 0x1ce   : > { %v3132_v6 = vcvt.s32.f32 %v948_v5  ;;  %367 = vst.msk [vmem:[#allocation2 + $0x60] sm:$0xff] %vm3972_vm0, %v2733_v51  ;;  %368 = vst.msk [vmem:[#allocation2 + $0x68] sm:$0xff] %vm3972_vm0, %v2733_v51 }
 0x1cf   : > { %369 = vst.msk [vmem:[#allocation2 + $0x70] sm:$0xff] %vm3972_vm0, %v2733_v51  ;;  %370 = vst.msk [vmem:[#allocation2 + $0x78] sm:$0xff] %vm3972_vm0, %v2733_v51 }
 0x1d0   : > { %951 = vmin.xlane.f32.xlu1 %v3132_v6  ;;  %371 = vst [vmem:[#allocation3] sm:$0x1] %v2733_v51 }
 0x239   : > { %v3138_v12 = vpop.xlane.xlu0 %741 }
 0x23a   : > { %vm743_vm2 = vcmp.eq.f32.partialorder %v3016_v8, %v3138_v12 }
 0x23b   : > { %v744_v14 = vsel %vm743_vm2, %v739_v13, inf  ;;  %v935_v13 = vcvt.s32.f32 %v933_v59 }
 0x23c   : > { %745 = vmin.xlane.f32.xlu0 %v744_v14 }
 0x23d   : > { %v3144_v21 = vpop.xlane.xlu1 %755  ;;  %v3146_v22 = vpop.xlane.xlu0 %769 }
 0x23e   : > { %vm757_vm3 = vcmp.eq.f32.partialorder %v3027_v15, %v3144_v21  ;;  %vm771_vm4 = vcmp.eq.f32.partialorder %v3029_v16, %v3146_v22 }
 0x23f   : > { %v758_v10 = vsel %vm757_vm3, %v753_v4, inf  ;;  %v772_v8 = vsel %vm771_vm4, %v767_v9, inf  ;;  %v3258_v4 = vstv %s1288_s17  ;;  %v1256_v9 = vadd.s32 8, %v3251_v20 }
 0x240   : > { %759 = vmin.xlane.f32.xlu1 %v758_v10  ;;  %773 = vmin.xlane.f32.xlu0 %v772_v8  ;;  %v1257_v10 = vadd.s32 16, %v3251_v20 }
 0x241   : > { %v3154_v27 = vpop.xlane.xlu1 %783  ;;  %v3156_v28 = vpop.xlane.xlu0 %797 }
 0x242   : > { %vm785_vm5 = vcmp.eq.f32.partialorder %v3043_v23, %v3154_v27  ;;  %vm799_vm6 = vcmp.eq.f32.partialorder %v3045_v24, %v3156_v28 }
 0x243   : > { %v786_v15 = vsel %vm785_vm5, %v781_v29, inf  ;;  %v800_v16 = vsel %vm799_vm6, %v795_v30, inf }
 0x244   : > { %787 = vmin.xlane.f32.xlu1 %v786_v15  ;;  %801 = vmin.xlane.f32.xlu0 %v800_v16  ;;  %v1259_v15 = vadd.s32 32, %v3251_v20 }
 0x245   : > { %v3164_v35 = vpop.xlane.xlu1 %811  ;;  %v3166_v36 = vpop.xlane.xlu0 %825 }
 0x246   : > { %vm813_vm7 = vcmp.eq.f32.partialorder %v3059_v31, %v3164_v35  ;;  %vm827_vm8 = vcmp.eq.f32.partialorder %v3061_v32, %v3166_v36 }
 0x247   : > { %v814_v23 = vsel %vm813_vm7, %v809_v37, inf  ;;  %v828_v24 = vsel %vm827_vm8, %v823_v38, inf }
 0x248   : > { %815 = vmin.xlane.f32.xlu1 %v814_v23  ;;  %829 = vmin.xlane.f32.xlu0 %v828_v24  ;;  %v1261_v23 = vadd.s32 48, %v3251_v20 }
 0x249   : > { %v3174_v43 = vpop.xlane.xlu1 %839  ;;  %v3176_v44 = vpop.xlane.xlu0 %853 }
 0x24a   : > { %vm841_vm9 = vcmp.eq.f32.partialorder %v3075_v39, %v3174_v43  ;;  %vm855_vm10 = vcmp.eq.f32.partialorder %v3077_v40, %v3176_v44  ;;  %v891_v39 = vand.u32 65535, %v3096_v49  ;;  %v905_v40 = vand.u32 65535, %v3099_v50 }
 0x24b   : > { %v842_v31 = vsel %vm841_vm9, %v837_v45, inf  ;;  %v856_v32 = vsel %vm855_vm10, %v851_v46, inf  ;;  %v919_v50 = vand.u32 65535, %v3112_v57  ;;  %v947_v57 = vand.u32 65535, %v3127_v3 }
 0x24c   : > { %843 = vmin.xlane.f32.xlu1 %v842_v31  ;;  %857 = vmin.xlane.f32.xlu0 %v856_v32  ;;  %v893_v5 = vcvt.s32.f32 %v891_v39  ;;  %v907_v7 = vcvt.s32.f32 %v905_v40  ;;  %v1263_v31 = vadd.s32 64, %v3251_v20  ;;  %v1264_v32 = vadd.s32 72, %v3251_v20 }
 0x24d   : > { %v3217_v41 = vpop.xlane.xlu1 %867  ;;  %v3219_v42 = vpop.xlane.xlu0 %881  ;;  %v921_v11 = vcvt.s32.f32 %v919_v50  ;;  %v949_v3 = vcvt.s32.f32 %v947_v57  ;;  %v1265_v39 = vadd.s32 80, %v3251_v20  ;;  %v1266_v50 = vadd.s32 88, %v3251_v20 }
 0x24e   : > { %vm869_vm11 = vcmp.eq.f32.partialorder %v3091_v47, %v3217_v41  ;;  %vm883_vm12 = vcmp.eq.f32.partialorder %v3093_v48, %v3219_v42  ;;  %v1268_v57 = vadd.s32 104, %v3251_v20 }
 0x24f   : > { %v870_v54 = vsel %vm869_vm11, %v865_v52, inf  ;;  %v884_v49 = vsel %vm883_vm12, %v879_v53, inf }
 0x250   : > { %871 = vmin.xlane.f32.xlu1 %v870_v54  ;;  %885 = vmin.xlane.f32.xlu0 %v884_v49 }
 0x251   : > { %v3229_v60 = vpop.xlane.xlu1 %895  ;;  %v3231_v61 = vpop.xlane.xlu0 %909 }
 0x252   : > { %vm897_vm13 = vcmp.eq.f32.partialorder %v3107_v55, %v3229_v60  ;;  %vm911_vm14 = vcmp.eq.f32.partialorder %v3109_v56, %v3231_v61 }
 0x253   : > { %v898_v47 = vsel %vm897_vm13, %v893_v5, inf  ;;  %v912_v48 = vsel %vm911_vm14, %v907_v7, inf  ;;  %v1267_v7 = vadd.s32 96, %v3251_v20 }
 0x254   : > { %899 = vmin.xlane.f32.xlu1 %v898_v47  ;;  %913 = vmin.xlane.f32.xlu0 %v912_v48 }
 0x255   : > { %v3238_v0 = vpop.xlane.xlu1 %923  ;;  %v3240_v58 = vpop.xlane.xlu0 %937 }
 0x256   : > { %vm925_vm15 = vcmp.eq.f32.partialorder %v3122_v62, %v3238_v0  ;;  %vm939_vm1 = vcmp.eq.f32.partialorder %v3124_v63, %v3240_v58  ;;  %v3254_v62 = vstv %s2138_s21  ;;  %s2736_s21 = smov [#allocation7]  }
 0x257   : > { %v926_v55 = vsel %vm925_vm15, %v921_v11, inf  ;;  %v940_v56 = vsel %vm939_vm1, %v935_v13, inf  ;;  %v1272_v63 = vadd.s32 %v3254_v62, %v3251_v20  ;;  %v1273_v1 = vadd.s32 %v3254_v62, %v1256_v9  ;;  %s2629_s22 = sshll.u32 %s2736_s21, 4  ;;  %s2630_s22 = int_to_ptr.vmem [resolvable:$false] %s2629_s22 }
 0x258   : > { %927 = vmin.xlane.f32.xlu1 %v926_v55  ;;  %941 = vmin.xlane.f32.xlu0 %v940_v56  ;;  %v1274_v17 = vadd.s32 %v3254_v62, %v1257_v10  ;;  %v1275_v30 = vadd.s32 %v3254_v62, %v1258_v18  ;;  %v1276_v25 = vadd.s32 %v3254_v62, %v1259_v15  ;;  %v1269_v55 = vadd.s32 112, %v3251_v20  ;;  %s2631_s23 = scalar_lea.vmem %s2630_s22, 32 }
 0x259   : > { %v3246_v14 = vpop.xlane.xlu1 %951  ;;  %vm1290_vm3 = vcmp.lt.s32.totalorder %v1272_v63, %v3258_v4  ;;  %vm1291_vm4 = vcmp.lt.s32.totalorder %v1273_v1, %v3258_v4  ;;  %v1277_v38 = vadd.s32 %v3254_v62, %v1260_v26  ;;  %v1278_v33 = vadd.s32 %v3254_v62, %v1261_v23 }
 0x25a   : > { %vm953_vm2 = vcmp.eq.f32.partialorder %v3132_v6, %v3246_v14  ;;  %v3263_v6 = vsel %vm1290_vm3, 1.0, %v2733_v51  ;;  %v3270_v8 = vsel %vm1291_vm4, 1.0, %v2733_v51  ;;  %vm1292_vm5 = vcmp.lt.s32.totalorder %v1274_v17, %v3258_v4 }
 0x25b   : > { %v954_v19 = vsel %vm953_vm2, %v949_v3, inf  ;;  %v3277_v29 = vsel %vm1292_vm5, 1.0, %v2733_v51  ;;  %vm1293_vm6 = vcmp.lt.s32.totalorder %v1275_v30, %v3258_v4  ;;  %vm1294_vm7 = vcmp.lt.s32.totalorder %v1276_v25, %v3258_v4 }
 0x25c   : > { %955 = vmin.xlane.f32.xlu1 %v954_v19  ;;  %v3284_v16 = vsel %vm1293_vm6, 1.0, %v2733_v51  ;;  %v3291_v37 = vsel %vm1294_vm7, 1.0, %v2733_v51  ;;  %vm1295_vm8 = vcmp.lt.s32.totalorder %v1277_v38, %v3258_v4  ;;  %vm1296_vm9 = vcmp.lt.s32.totalorder %v1278_v33, %v3258_v4 }
 0x25d   : > { %v3298_v24 = vsel %vm1295_vm8, 1.0, %v2733_v51  ;;  %v3305_v45 = vsel %vm1296_vm9, 1.0, %v2733_v51  ;;  %v1279_v46 = vadd.s32 %v3254_v62, %v1262_v34  ;;  %v1280_v52 = vadd.s32 %v3254_v62, %v1263_v31 }
 0x25e   : > { %v1281_v53 = vadd.s32 %v3254_v62, %v1264_v32  ;;  %v1282_v49 = vadd.s32 %v3254_v62, %v1265_v39  ;;  %v1283_v5 = vadd.s32 %v3254_v62, %v1266_v50  ;;  %v1284_v48 = vadd.s32 %v3254_v62, %v1267_v7 }
 0x25f   : > { %vm1297_vm10 = vcmp.lt.s32.totalorder %v1279_v46, %v3258_v4  ;;  %vm1298_vm11 = vcmp.lt.s32.totalorder %v1280_v52, %v3258_v4  ;;  %v1285_v13 = vadd.s32 %v3254_v62, %v1268_v57  ;;  %v1286_v3 = vadd.s32 %v3254_v62, %v1269_v55 }
 0x260   : > { %v3314_v40 = vsel %vm1297_vm10, 1.0, %v2733_v51  ;;  %v3321_v54 = vsel %vm1298_vm11, 1.0, %v2733_v51  ;;  %vm1299_vm12 = vcmp.lt.s32.totalorder %v1281_v53, %v3258_v4  ;;  %vm1300_vm13 = vcmp.lt.s32.totalorder %v1282_v49, %v3258_v4 }
 0x261   : > { %v3328_v59 = vsel %vm1299_vm12, 1.0, %v2733_v51  ;;  %v3335_v47 = vsel %vm1300_vm13, 1.0, %v2733_v51  ;;  %vm1301_vm14 = vcmp.lt.s32.totalorder %v1283_v5, %v3258_v4  ;;  %vm1302_vm15 = vcmp.lt.s32.totalorder %v1284_v48, %v3258_v4 }
 0x262   : > { %v3342_v11 = vsel %vm1301_vm14, 1.0, %v2733_v51  ;;  %v3349_v56 = vsel %vm1302_vm15, 1.0, %v2733_v51  ;;  %vm1303_vm1 = vcmp.lt.s32.totalorder %v1285_v13, %v3258_v4  ;;  %vm1304_vm2 = vcmp.lt.s32.totalorder %v1286_v3, %v3258_v4 }
 0x263   : > { %v3355_v19 = vsel %vm1303_vm1, 1.0, %v2733_v51  ;;  %v748_v63 = vcvt.f32.s32 %v3138_v12  ;;  %v762_v9 = vcvt.f32.s32 %v3144_v21  ;;  %v3362_v1 = vsel %vm1304_vm2, 1.0, %v2733_v51 }
 0x264   : > { %v776_v10 = vcvt.f32.s32 %v3146_v22  ;;  %v1270_v18 = vadd.s32 120, %v3251_v20  ;;  %v790_v21 = vcvt.f32.s32 %v3154_v27  ;;  %v804_v23 = vcvt.f32.s32 %v3156_v28 }
 0x265   : > { %v749_v30 = vshll.u32 %v748_v63, 16  ;;  %v763_v26 = vshll.u32 %v762_v9, 16  ;;  %v818_v52 = vcvt.f32.s32 %v3164_v35  ;;  %v832_v53 = vcvt.f32.s32 %v3166_v36 }
 0x266   : > { %v1287_v25 = vadd.s32 %v3254_v62, %v1270_v18  ;;  %v777_v38 = vshll.u32 %v776_v10, 16  ;;  %v2734_v62 = vmov 1.0   ;;  %v791_v32 = vshll.u32 %v790_v21, 16 }
 0x267   : > { %v805_v39 = vshll.u32 %v804_v23, 16  ;;  %v819_v57 = vshll.u32 %v818_v52, 16  ;;  %v833_v13 = vshll.u32 %v832_v53, 16  ;;  %v846_v55 = vcvt.f32.s32 %v3174_v43 }
 0x268   : > { %vm1305_vm3 = vcmp.lt.s32.totalorder %v1287_v25, %v3258_v4  ;;  %v860_v3 = vcvt.f32.s32 %v3176_v44  ;;  %v874_v25 = vcvt.f32.s32 %v3217_v41 }
 0x269   : > { %v3376_v31 = vsel %vm1305_vm3, 1.0, %v2733_v51 }
 0x28f   : > { %1564 = vxpose.xlu1.b32.start [1/16] (narrow) %v3263_v6, 8 }
 0x293   : > { %1565 = vxpose.xlu1.b32.cont [2/16] (narrow) %v3270_v8, 8 }
 0x297   : > { %1566 = vxpose.xlu1.b32.cont [3/16] (narrow) %v3277_v29, 8 }
 0x29b   : > { %1567 = vxpose.xlu1.b32.cont [4/16] (narrow) %v3284_v16, 8 }
 0x29f   : > { %1568 = vxpose.xlu1.b32.cont [5/16] (narrow) %v3291_v37, 8 }
 0x2a3   : > { %1569 = vxpose.xlu1.b32.cont [6/16] (narrow) %v3298_v24, 8 }
 0x2a7   : > { %1570 = vxpose.xlu1.b32.cont [7/16] (narrow) %v3305_v45, 8 }
 0x2ab   : > { %1571 = vxpose.xlu1.b32.cont [8/16] (narrow) %v3314_v40, 8 }
 0x2af   : > { %1572 = vxpose.xlu1.b32.cont [9/16] (narrow) %v3321_v54, 8 }
 0x2b3   : > { %1573 = vxpose.xlu1.b32.cont [10/16] (narrow) %v3328_v59, 8 }
 0x2b7   : > { %1574 = vxpose.xlu1.b32.cont [11/16] (narrow) %v3335_v47, 8 }
 0x2bb   : > { %1575 = vxpose.xlu1.b32.cont [12/16] (narrow) %v3342_v11, 8 }
 0x2bf   : > { %1576 = vxpose.xlu1.b32.cont [13/16] (narrow) %v3349_v56, 8 }
 0x2c3   : > { %1577 = vxpose.xlu1.b32.cont [14/16] (narrow) %v3355_v19, 8 }
 0x2c5   : > { %v746_v17 = vpop.xlane.xlu0 %745 }
 0x2c6   : > { %v747_v15 = vcvt.f32.s32 %v746_v17 }
 0x2c7   : > { %1578 = vxpose.xlu1.b32.cont [15/16] (narrow) %v3362_v1, 8 }
 0x2c8   : > { %v3368_v12 = vadd.s32 %v749_v30, %v747_v15  ;;  %v847_v30 = vshll.u32 %v846_v55, 16  ;;  %v861_v15 = vshll.u32 %v860_v3, 16 }
 0x2c9   : > { %v760_v33 = vpop.xlane.xlu1 %759  ;;  %v774_v34 = vpop.xlane.xlu0 %773 }
 0x2ca   : > { %v761_v22 = vcvt.f32.s32 %v760_v33  ;;  %v775_v46 = vcvt.f32.s32 %v774_v34  ;;  %vm961_vm4 = vcmp.eq.s32.totalorder %v3010_v2, %v3368_v12  ;;  %v2609_v12 = vld [vmem:[%s2870_s20 + $0x8] sm:$0xff] }
 0x2cb   : > { %2394 = vmatprep.mubr.msk.f32.mxu1 %vm961_vm4, %v2734_v62  ;;  %v2090_v27 = vsel %vm961_vm4, 1.0, %v2733_v51  ;;  %1579 = vxpose.xlu1.b32.end [16/16] (narrow) %v3376_v31, 8 }
 0x2cc   : > { %v3387_v28 = vadd.s32 %v763_v26, %v761_v22  ;;  %v3389_v4 = vadd.s32 %v777_v38, %v775_v46  ;;  %1354 = vxpose.xlu0.b32.start [1/16] %v2090_v27, 128  ;;  %v888_v26 = vcvt.f32.s32 %v3219_v42  ;;  %v875_v22 = vshll.u32 %v874_v25, 16 }
 0x2cd   : > { %v788_v49 = vpop.xlane.xlu1 %787  ;;  %v802_v50 = vpop.xlane.xlu0 %801  ;;  %v902_v27 = vcvt.f32.s32 %v3229_v60 }
 0x2ce   : > { %v789_v5 = vcvt.f32.s32 %v788_v49  ;;  %v803_v7 = vcvt.f32.s32 %v802_v50  ;;  %vm962_vm5 = vcmp.eq.s32.totalorder %v3010_v2, %v3387_v28  ;;  %vm963_vm6 = vcmp.eq.s32.totalorder %v3010_v2, %v3389_v4 }
 0x2cf   : > { %2395 = vmatmul.mubr.msk.f32.vlgmr.msra.gmra.mxu1 %vm962_vm5, %v2734_v62  ;;  %v2091_v35 = vsel %vm962_vm5, 1.0, %v2733_v51  ;;  %v2092_v43 = vsel %vm963_vm6, 1.0, %v2733_v51  ;;  %v889_v46 = vshll.u32 %v888_v26, 16 }
 0x2d0   : > { %v3405_v36 = vadd.s32 %v791_v32, %v789_v5  ;;  %v3407_v48 = vadd.s32 %v805_v39, %v803_v7  ;;  %1355 = vxpose.xlu0.b32.cont [2/16] %v2091_v35, 128  ;;  %2397 = vmatprep.mubr.msk.f32.mxu1 %vm963_vm6, %v2734_v62  ;;  %v916_v32 = vcvt.f32.s32 %v3231_v61  ;;  %v903_v5 = vshll.u32 %v902_v27, 16 }
 0x2d1   : > { %v816_v63 = vpop.xlane.xlu1 %815  ;;  %v830_v9 = vpop.xlane.xlu0 %829  ;;  %v930_v35 = vcvt.f32.s32 %v3238_v0 }
 0x2d2   : > { %v817_v10 = vcvt.f32.s32 %v816_v63  ;;  %v831_v17 = vcvt.f32.s32 %v830_v9  ;;  %vm964_vm7 = vcmp.eq.s32.totalorder %v3010_v2, %v3405_v36  ;;  %vm965_vm8 = vcmp.eq.s32.totalorder %v3010_v2, %v3407_v48 }
 0x2d3   : > { %2398 = vmatmul.mubr.msk.f32.gmra.mxu1 %vm964_vm7, %v2734_v62  ;;  %v2093_v41 = vsel %vm964_vm7, 1.0, %v2733_v51  ;;  %v2094_v60 = vsel %vm965_vm8, 1.0, %v2733_v51  ;;  %v917_v7 = vshll.u32 %v916_v32, 16 }
 0x2d4   : > { %v3427_v44 = vadd.s32 %v819_v57, %v817_v10  ;;  %v3429_v18 = vadd.s32 %v833_v13, %v831_v17  ;;  %1356 = vxpose.xlu0.b32.cont [3/16] %v2092_v43, 128  ;;  %2400 = vmatprep.mubr.msk.f32.mxu1 %vm965_vm8, %v2734_v62  ;;  %v944_v57 = vcvt.f32.s32 %v3240_v58  ;;  %v931_v10 = vshll.u32 %v930_v35, 16 }
 0x2d5   : > { %v844_v38 = vpop.xlane.xlu1 %843  ;;  %v858_v21 = vpop.xlane.xlu0 %857  ;;  %v958_v43 = vcvt.f32.s32 %v3246_v14  ;;  %v1174_v35 = vand.u32 255, %v3010_v2 }
 0x2d6   : > { %v845_v23 = vcvt.f32.s32 %v844_v38  ;;  %v859_v33 = vcvt.f32.s32 %v858_v21  ;;  %vm966_vm9 = vcmp.eq.s32.totalorder %v3010_v2, %v3427_v44  ;;  %vm967_vm10 = vcmp.eq.s32.totalorder %v3010_v2, %v3429_v18 }
 0x2d7   : > { %2401 = vmatmul.mubr.msk.f32.gmra.mxu1 %vm966_vm9, %v2734_v62  ;;  %v2095_v0 = vsel %vm966_vm9, 1.0, %v2733_v51  ;;  %v945_v17 = vshll.u32 %v944_v57, 16  ;;  %v2096_v14 = vsel %vm967_vm10, 1.0, %v2733_v51 }
 0x2d8   : > { %v3449_v42 = vadd.s32 %v847_v30, %v845_v23  ;;  %v3451_v34 = vadd.s32 %v861_v15, %v859_v33  ;;  %1357 = vxpose.xlu0.b32.cont [4/16] %v2093_v41, 128  ;;  %2403 = vmatprep.mubr.msk.f32.mxu1 %vm967_vm10, %v2734_v62  ;;  %v959_v33 = vshll.u32 %v958_v43, 16  ;;  %v2610_v43 = vld [vmem:[%s2870_s20] sm:$0xff] }
 0x2d9   : > { %v872_v39 = vpop.xlane.xlu1 %871  ;;  %v886_v52 = vpop.xlane.xlu0 %885 }
 0x2da   : > { %v873_v53 = vcvt.f32.s32 %v872_v39  ;;  %v887_v49 = vcvt.f32.s32 %v886_v52  ;;  %vm968_vm11 = vcmp.eq.s32.totalorder %v3010_v2, %v3449_v42  ;;  %vm969_vm12 = vcmp.eq.s32.totalorder %v3010_v2, %v3451_v34 }
 0x2db   : > { %2404 = vmatmul.mubr.msk.f32.gmra.mxu1 %vm968_vm11, %v2734_v62  ;;  %v2098_v27 = vsel %vm969_vm12, 1.0, %v2733_v51 }
 0x2dc   : > { %v3471_v61 = vadd.s32 %v875_v22, %v873_v53  ;;  %v3473_v50 = vadd.s32 %v889_v46, %v887_v49  ;;  %1358 = vxpose.xlu0.b32.cont [5/16] %v2094_v60, 128  ;;  %2406 = vmatprep.mubr.msk.f32.mxu1 %vm969_vm12, %v2734_v62  ;;  %v2097_v22 = vsel %vm968_vm11, 1.0, %v2733_v51 }
 0x2dd   : > { %v900_v13 = vpop.xlane.xlu1 %899  ;;  %v914_v55 = vpop.xlane.xlu0 %913 }
 0x2de   : > { %v901_v3 = vcvt.f32.s32 %v900_v13  ;;  %v915_v63 = vcvt.f32.s32 %v914_v55  ;;  %vm970_vm13 = vcmp.eq.s32.totalorder %v3010_v2, %v3471_v61  ;;  %vm971_vm14 = vcmp.eq.s32.totalorder %v3010_v2, %v3473_v50 }
 0x2df   : > { %2407 = vmatmul.mubr.msk.f32.gmra.mxu1 %vm970_vm13, %v2734_v62  ;;  %v2099_v32 = vsel %vm970_vm13, 1.0, %v2733_v51  ;;  %v2100_v39 = vsel %vm971_vm14, 1.0, %v2733_v51 }
 0x2e0   : > { %v3493_v58 = vadd.s32 %v903_v5, %v901_v3  ;;  %v3495_v9 = vadd.s32 %v917_v7, %v915_v63  ;;  %1359 = vxpose.xlu0.b32.cont [6/16] %v2095_v0, 128  ;;  %2409 = vmatprep.mubr.msk.f32.mxu1 %vm971_vm14, %v2734_v62  ;;  %v1173_v7 = vshra.s32 %v3010_v2, 8 }
 0x2e1   : > { %v928_v30 = vpop.xlane.xlu1 %927  ;;  %v942_v15 = vpop.xlane.xlu0 %941 }
 0x2e2   : > { %v929_v25 = vcvt.f32.s32 %v928_v30  ;;  %v943_v26 = vcvt.f32.s32 %v942_v15  ;;  %vm3973_vm15 = vcmp.eq.s32.totalorder %v3010_v2, %v3493_v58  ;;  %vm973_vm1 = vcmp.eq.s32.totalorder %v3010_v2, %v3495_v9 }
 0x2e3   : > { %2410 = vmatmul.mubr.msk.f32.gmra.mxu1 %vm3973_vm15, %v2734_v62  ;;  %v2101_v52 = vsel %vm3973_vm15, 1.0, %v2733_v51  ;;  %v2102_v53 = vsel %vm973_vm1, 1.0, %v2733_v51 }
 0x2e4   : > { %v3514_v38 = vadd.s32 %v931_v10, %v929_v25  ;;  %v3516_v21 = vadd.s32 %v945_v17, %v943_v26  ;;  %1360 = vxpose.xlu0.b32.cont [7/16] %v2096_v14, 128  ;;  %2412 = vmatprep.mubr.msk.f32.mxu1 %vm973_vm1, %v2734_v62  ;;  %v2611_v26 = vld [vmem:[%s2870_s20 + $0x18] sm:$0xff] }
 0x2e5   : > { %v956_v23 = vpop.xlane.xlu1 %955 }
 0x2e6   : > { %v957_v41 = vcvt.f32.s32 %v956_v23  ;;  %vm974_vm2 = vcmp.eq.s32.totalorder %v3010_v2, %v3514_v38  ;;  %vm975_vm3 = vcmp.eq.s32.totalorder %v3010_v2, %v3516_v21 }
 0x2e7   : > { %2413 = vmatmul.mubr.msk.f32.gmra.mxu1 %vm974_vm2, %v2734_v62  ;;  %v2103_v49 = vsel %vm974_vm2, 1.0, %v2733_v51  ;;  %v2104_v60 = vsel %vm975_vm3, 1.0, %v2733_v51 }
 0x2e8   : > { %v3534_v46 = vadd.s32 %v959_v33, %v957_v41  ;;  %1361 = vxpose.xlu0.b32.cont [8/16] %v2097_v22, 128  ;;  %2415 = vmatprep.mubr.msk.f32.mxu1 %vm975_vm3, %v2734_v62  ;;  %v2612_v33 = vld [vmem:[%s2870_s20 + $0x10] sm:$0xff] }
 0x2ea   : > { %vm976_vm0 = vcmp.eq.s32.totalorder %v3010_v2, %v3534_v46 }
 0x2eb   : > { %2416 = vmatmul.mubr.msk.f32.gmra.mxu1 %vm976_vm0, %v2734_v62  ;;  %v2105_v5 = vsel %vm976_vm0, 1.0, %v2733_v51 }
 0x2ec   : > { %2419 = vmatpush3.xpose.msk.msra.mxu1 %vm976_vm0, %v2734_v62  ;;  %1362 = vxpose.xlu0.b32.cont [9/16] %v2098_v27, 128 }
 0x2ed   : > { %2420 = vmatprep.subr.mxu1 %v2733_v51 }
 0x2f0   : > { %2421 = vmatpush3.xpose.msk.msra.mxu1 %vm975_vm3, %v2734_v62  ;;  %1363 = vxpose.xlu0.b32.cont [10/16] %v2099_v32, 128  ;;  %v2613_v32 = vld [vmem:[%s2870_s20 + $0x28] sm:$0xff] }
 0x2f1   : > { %2422 = vmatprep.subr.mxu1 %v2733_v51 }
 0x2f4   : > { %2423 = vmatpush3.xpose.msk.msra.mxu1 %vm974_vm2, %v2734_v62  ;;  %1364 = vxpose.xlu0.b32.cont [11/16] %v2100_v39, 128 }
 0x2f5   : > { %2424 = vmatprep.subr.mxu1 %v2733_v51 }
 0x2f8   : > { %2425 = vmatpush3.xpose.msk.msra.mxu1 %vm973_vm1, %v2734_v62  ;;  %1365 = vxpose.xlu0.b32.cont [12/16] %v2101_v52, 128 }
 0x2f9   : > { %2426 = vmatprep.subr.mxu1 %v2733_v51 }
 0x2fc   : > { %2427 = vmatpush3.xpose.msk.msra.mxu1 %vm3973_vm15, %v2734_v62  ;;  %1366 = vxpose.xlu0.b32.cont [13/16] %v2102_v53, 128  ;;  %vm3974_vm15 = vmmov 0  }
 0x2fd   : > { %2428 = vmatprep.subr.mxu1 %v2733_v51  ;;  %2450 = vmatprep.mubr.msk.f32.mxu1 %vm3974_vm15, %v2733_v51  ;;  %vm1172_vm15 = vcmp.eq.s32.totalorder %v3251_v20, 0 }
 0x2fe   : > { %v1175_v57 = vsel %vm1172_vm15, %v1173_v7, %v1174_v35 }
 0x2ff   : > { %v1176_v13 = vcvt.s32.f32 %v1175_v57 }
 0x300   : > { %2429 = vmatpush3.xpose.msk.msra.mxu1 %vm971_vm14, %v2734_v62  ;;  %1367 = vxpose.xlu0.b32.cont [14/16] %v2103_v49, 128 }
 0x301   : > { %2430 = vmatprep.subr.mxu1 %v2733_v51 }
 0x304   : > { %2431 = vmatpush3.xpose.msk.msra.mxu1 %vm970_vm13, %v2734_v62  ;;  %1368 = vxpose.xlu0.b32.cont [15/16] %v2104_v60, 128  ;;  %v2614_v60 = vld [vmem:[%s2870_s20 + $0x20] sm:$0xff] }
 0x305   : > { %2432 = vmatprep.subr.mxu1 %v2733_v51 }
 0x308   : > { %2433 = vmatpush3.xpose.msk.msra.mxu1 %vm969_vm12, %v2734_v62  ;;  %1369 = vxpose.xlu0.b32.end [16/16] %v2105_v5, 128 }
 0x309   : > { %2434 = vmatprep.subr.mxu1 %v2733_v51 }
 0x30b   : > { %v1580_v9 = vpop.trf.xlu1 }
 0x30c   : > { %2435 = vmatpush3.xpose.msk.msra.mxu1 %vm968_vm11, %v2734_v62 }
 0x30d   : > { %2436 = vmatprep.subr.mxu1 %v2733_v51 }
 0x310   : > { %2437 = vmatpush3.xpose.msk.msra.mxu1 %vm967_vm10, %v2734_v62 }
 0x311   : > { %2438 = vmatprep.subr.mxu1 %v2733_v51 }
 0x314   : > { %2439 = vmatpush3.xpose.msk.msra.mxu1 %vm966_vm9, %v2734_v62 }
 0x315   : > { %2440 = vmatprep.subr.mxu1 %v2733_v51 }
 0x318   : > { %2441 = vmatpush3.xpose.msk.msra.mxu1 %vm965_vm8, %v2734_v62 }
 0x319   : > { %2442 = vmatprep.subr.mxu1 %v2733_v51 }
 0x31c   : > { %2443 = vmatpush3.xpose.msk.msra.mxu1 %vm964_vm7, %v2734_v62 }
 0x31d   : > { %2444 = vmatprep.subr.mxu1 %v2733_v51 }
 0x320   : > { %2445 = vmatpush3.xpose.msk.msra.mxu1 %vm963_vm6, %v2734_v62 }
 0x321   : > { %2446 = vmatprep.subr.mxu1 %v2733_v51 }
 0x324   : > { %2447 = vmatpush3.xpose.msk.msra.mxu1 %vm962_vm5, %v2734_v62 }
 0x325   : > { %2448 = vmatprep.subr.mxu1 %v2733_v51 }
 0x328   : > { %2449 = vmatpush3.xpose.msk.msra.mxu1 %vm961_vm4, %v2734_v62 }
 0x32b   : > { %2451 = vmatmul.mubr.f32.vlgmr.msra.gmra.mxu1 %v1176_v13  ;;  %v2615_v13 = vld [vmem:[%s2870_s20 + $0x38] sm:$0xff] }
 0x348   : > { %v1370_v55 = vpop.trf.xlu0 }
 0x349   : > { %2485 = vmatprep.mubr.f32.mxu0 %v1370_v55 }
 0x34c   : > { %v1371_v3 = vpop.trf.xlu0 }
 0x34d   : > { %2486 = vmatmul.mubr.f32.vlgmr.msra.gmra.mxu0 %v1371_v3 }
 0x34e   : > { %2510 = vmatpush3.msk.msra.mxu0 %vm976_vm0, %v2734_v62  ;;  %vm3981_vm0 = vcmp.eq.s32.totalorder %v3010_v2, %v3493_v58 }
 0x34f   : > { %2511 = vmatprep.subr.mxu0 %v2733_v51 }
 0x350   : > { %2512 = vmatpush3.msk.msra.mxu0 %vm975_vm3, %v2734_v62  ;;  %v1372_v20 = vpop.trf.xlu0 }
 0x351   : > { %2513 = vmatprep.subr.mxu0 %v2733_v51  ;;  %2488 = vmatprep.mubr.f32.mxu0 %v1372_v20 }
 0x352   : > { %2514 = vmatpush3.msk.msra.mxu0 %vm974_vm2, %v2734_v62 }
 0x353   : > { %2515 = vmatprep.subr.mxu0 %v2733_v51 }
 0x354   : > { %2516 = vmatpush3.msk.msra.mxu0 %vm973_vm1, %v2734_v62  ;;  %v1373_v63 = vpop.trf.xlu0 }
 0x355   : > { %2517 = vmatprep.subr.mxu0 %v2733_v51  ;;  %2489 = vmatmul.mubr.f32.gmra.mxu0 %v1373_v63 }
 0x356   : > { %2518 = vmatpush3.msk.msra.mxu0 %vm3981_vm0, %v2734_v62 }
 0x357   : > { %2519 = vmatprep.subr.mxu0 %v2733_v51 }
 0x358   : > { %2520 = vmatpush3.msk.msra.mxu0 %vm971_vm14, %v2734_v62  ;;  %v1374_v0 = vpop.trf.xlu0 }
 0x359   : > { %2521 = vmatprep.subr.mxu0 %v2733_v51  ;;  %2491 = vmatprep.mubr.f32.mxu0 %v1374_v0  ;;  %v2616_v0 = vld [vmem:[%s2870_s20 + $0x30] sm:$0xff] }
 0x35a   : > { %2522 = vmatpush3.msk.msra.mxu0 %vm970_vm13, %v2734_v62 }
 0x35b   : > { %2523 = vmatprep.subr.mxu0 %v2733_v51 }
 0x35c   : > { %2524 = vmatpush3.msk.msra.mxu0 %vm969_vm12, %v2734_v62  ;;  %v1375_v58 = vpop.trf.xlu0 }
 0x35d   : > { %2525 = vmatprep.subr.mxu0 %v2733_v51  ;;  %2492 = vmatmul.mubr.f32.gmra.mxu0 %v1375_v58 }
 0x35e   : > { %2526 = vmatpush3.msk.msra.mxu0 %vm968_vm11, %v2734_v62 }
 0x35f   : > { %2527 = vmatprep.subr.mxu0 %v2733_v51 }
 0x360   : > { %2528 = vmatpush3.msk.msra.mxu0 %vm967_vm10, %v2734_v62  ;;  %v1376_v61 = vpop.trf.xlu0 }
 0x361   : > { %2529 = vmatprep.subr.mxu0 %v2733_v51  ;;  %2494 = vmatprep.mubr.f32.mxu0 %v1376_v61 }
 0x362   : > { %2530 = vmatpush3.msk.msra.mxu0 %vm966_vm9, %v2734_v62 }
 0x363   : > { %2531 = vmatprep.subr.mxu0 %v2733_v51 }
 0x364   : > { %2532 = vmatpush3.msk.msra.mxu0 %vm965_vm8, %v2734_v62  ;;  %v1377_v42 = vpop.trf.xlu0 }
 0x365   : > { %2533 = vmatprep.subr.mxu0 %v2733_v51  ;;  %2495 = vmatmul.mubr.f32.gmra.mxu0 %v1377_v42 }
 0x366   : > { %2534 = vmatpush3.msk.msra.mxu0 %vm964_vm7, %v2734_v62 }
 0x367   : > { %2535 = vmatprep.subr.mxu0 %v2733_v51 }
 0x368   : > { %2536 = vmatpush3.msk.msra.mxu0 %vm963_vm6, %v2734_v62  ;;  %v1378_v44 = vpop.trf.xlu0 }
 0x369   : > { %2537 = vmatprep.subr.mxu0 %v2733_v51  ;;  %2497 = vmatprep.mubr.f32.mxu0 %v1378_v44 }
 0x36a   : > { %2538 = vmatpush3.msk.msra.mxu0 %vm962_vm5, %v2734_v62  ;;  %vm3983_vm5 = vcmask 130048  }
 0x36b   : > { %2539 = vmatprep.subr.mxu0 %v2733_v51  ;;  %vm3984_vm6 = vmmov %vm3983_vm5 }
 0x36c   : > { %2540 = vmatpush3.msk.msra.mxu0 %vm961_vm4, %v2734_v62  ;;  %v1379_v36 = vpop.trf.xlu0  ;;  %vm3982_vm4 = vmmov 0   ;;  %vm3985_vm7 = vmmov %vm3983_vm5 }
 0x36d   : > { %2498 = vmatmul.mubr.f32.gmra.mxu0 %v1379_v36  ;;  %vm3986_vm8 = vmmov %vm3983_vm5  ;;  %v2617_v36 = vld [vmem:[%s2870_s20 + $0x48] sm:$0xff] }
 0x36e   : > { %vm3987_vm9 = vmmov %vm3983_vm5 }
 0x36f   : > { %vm3988_vm10 = vmmov %vm3983_vm5 }
 0x370   : > { %v1380_v4 = vpop.trf.xlu0  ;;  %vm3989_vm11 = vmmov %vm3983_vm5 }
 0x371   : > { %2500 = vmatprep.mubr.f32.mxu0 %v1380_v4  ;;  %vm3990_vm12 = vmmov %vm3983_vm5 }
 0x372   : > { %vm3991_vm13 = vmmov %vm3983_vm5 }
 0x373   : > { %vm3992_vm14 = vmmov %vm3983_vm5 }
 0x374   : > { %v1381_v48 = vpop.trf.xlu0  ;;  %vm3993_vm15 = vmmov %vm3983_vm5 }
 0x375   : > { %2501 = vmatmul.mubr.f32.gmra.mxu0 %v1381_v48  ;;  %vm3994_vm1 = vmmov %vm3983_vm5 }
 0x376   : > { %vm3995_vm2 = vmmov %vm3994_vm1 }
 0x377   : > { %vm3996_vm3 = vmmov %vm3994_vm1 }
 0x378   : > { %v1382_v18 = vpop.trf.xlu0  ;;  %vm3997_vm0 = vmmov %vm3994_vm1 }
 0x379   : > { %2503 = vmatprep.mubr.f32.mxu0 %v1382_v18 }
 0x37c   : > { %v1383_v34 = vpop.trf.xlu0 }
 0x37d   : > { %2504 = vmatmul.mubr.f32.gmra.mxu0 %v1383_v34 }
 0x380   : > { %v1384_v28 = vpop.trf.xlu0 }
 0x381   : > { %2506 = vmatprep.mubr.f32.mxu0 %v1384_v28  ;;  %v2618_v28 = vld [vmem:[%s2870_s20 + $0x40] sm:$0xff] }
 0x384   : > { %v1385_v50 = vpop.trf.xlu0 }
 0x385   : > { %2507 = vmatmul.mubr.f32.gmra.mxu0 %v1385_v50 }
 0x386   : > { %2541 = vmatprep.mubr.msk.f32.mxu0 %vm3982_vm4, %v2733_v51  ;;  %vm3998_vm4 = vmmov %vm3997_vm0 }
 0x389   : > { %2542 = vmatmul.mubr.f32.vlgmr.msra.gmra.mxu0 %v1580_v9 }
 0x38f   : > { %v2396_v2 = vpop.f32.mrf.mxu1 }
 0x390   : > { %1155 = vst.msk [vmem:[%s3748_s26 + $0x8] sm:$0xff] %vm3983_vm5, %v2396_v2  ;;  %v1669_v62 = vsub.f32 %v2396_v2, %v2609_v12  ;;  %vm3999_vm5 = vmmov %vm3997_vm0 }
 0x391   : > { %v1075_v10 = vpop.f32.mrf.mxu1 }
 0x392   : > { %v1685_v17 = vmul.f32 %v1669_v62, %v1669_v62  ;;  %1154 = vst.msk [vmem:[%s3748_s26] sm:$0xff] %vm3984_vm6, %v1075_v10  ;;  %v1668_v30 = vsub.f32 %v1075_v10, %v2610_v43  ;;  %vm4000_vm6 = vmmov %vm3997_vm0  ;;  %v2619_v62 = vld [vmem:[%s2870_s20 + $0x58] sm:$0xff] }
 0x393   : > { %v2399_v15 = vpop.f32.mrf.mxu1 }
 0x394   : > { %v1684_v25 = vmul.f32 %v1668_v30, %v1668_v30  ;;  %1157 = vst.msk [vmem:[%s3748_s26 + $0x18] sm:$0xff] %vm3985_vm7, %v2399_v15  ;;  %v1671_v14 = vsub.f32 %v2399_v15, %v2611_v26  ;;  %v1703_v38 = vsel %vm3986_vm8, %v1685_v17, 0.0  ;;  %vm4001_vm7 = vmmov %vm3997_vm0  ;;  %v2620_v15 = vld [vmem:[%s2870_s20 + $0x50] sm:$0xff] }
 0x395   : > { %1704 = vadd.xlane.f32.xlu1 %v1703_v38  ;;  %v1085_v21 = vpop.f32.mrf.mxu1  ;;  %vm4002_vm8 = vmmov %vm3997_vm0 }
 0x396   : > { %v1687_v23 = vmul.f32 %v1671_v14, %v1671_v14  ;;  %1156 = vst.msk [vmem:[%s3748_s26 + $0x10] sm:$0xff] %vm3987_vm9, %v1085_v21  ;;  %v1670_v41 = vsub.f32 %v1085_v21, %v2612_v33  ;;  %v1700_v22 = vsel %vm3988_vm10, %v1684_v25, 0.0  ;;  %vm4003_vm9 = vmmov %vm3997_vm0  ;;  %v2621_v21 = vld [vmem:[%s2870_s20 + $0x68] sm:$0xff] }
 0x397   : > { %v2402_v46 = vpop.f32.mrf.mxu1  ;;  %1701 = vadd.xlane.f32.xlu0 %v1700_v22  ;;  %vm4004_vm10 = vmmov %vm3997_vm0 }
 0x398   : > { %v1686_v27 = vmul.f32 %v1670_v41, %v1670_v41  ;;  %1159 = vst.msk [vmem:[%s3748_s26 + $0x28] sm:$0xff] %vm3989_vm11, %v2402_v46  ;;  %v1673_v39 = vsub.f32 %v2402_v46, %v2613_v32  ;;  %v1709_v52 = vsel %vm3990_vm12, %v1687_v23, 0.0  ;;  %vm4005_vm11 = vmmov %vm3997_vm0  ;;  %v2622_v46 = vld [vmem:[%s2870_s20 + $0x60] sm:$0xff] }
 0x399   : > { %1710 = vadd.xlane.f32.xlu1 %v1709_v52  ;;  %v1095_v53 = vpop.f32.mrf.mxu1  ;;  %vm4006_vm12 = vmmov %vm3997_vm0 }
 0x39a   : > { %v1689_v49 = vmul.f32 %v1673_v39, %v1673_v39  ;;  %1158 = vst.msk [vmem:[%s3748_s26 + $0x20] sm:$0xff] %vm3991_vm13, %v1095_v53  ;;  %v1672_v5 = vsub.f32 %v1095_v53, %v2614_v60  ;;  %v1706_v7 = vsel %vm3992_vm14, %v1686_v27, 0.0  ;;  %vm4007_vm13 = vmmov %vm3997_vm0  ;;  %v2623_v53 = vld [vmem:[%s2870_s20 + $0x78] sm:$0xff] }
 0x39b   : > { %v2405_v35 = vpop.f32.mrf.mxu1  ;;  %1707 = vadd.xlane.f32.xlu0 %v1706_v7  ;;  %vm4008_vm14 = vmmov %vm3997_vm0 }
 0x39c   : > { %v1688_v57 = vmul.f32 %v1672_v5, %v1672_v5  ;;  %1161 = vst.msk [vmem:[%s3748_s26 + $0x38] sm:$0xff] %vm3993_vm15, %v2405_v35  ;;  %v1675_v55 = vsub.f32 %v2405_v35, %v2615_v13  ;;  %v1715_v3 = vsel %vm3994_vm1, %v1689_v49, 0.0  ;;  %vm4009_vm15 = vmmov %vm3997_vm0  ;;  %v2624_v35 = vld [vmem:[%s2870_s20 + $0x70] sm:$0xff]  ;;  %s1865_s20 = sshll.u32 %s306_s28, 4  ;;  %s1866_s20 = int_to_ptr.vmem [resolvable:$true] %s1865_s20 }
 0x39d   : > { %1716 = vadd.xlane.f32.xlu1 %v1715_v3  ;;  %v1105_v20 = vpop.f32.mrf.mxu1  ;;  %vm4010_vm1 = vmmov %vm3997_vm0  ;;  %s2625_s17 = scalar_lea.vmem %s1866_s20, 16  ;;  %p2632_p1 = scmp.lt.s32.totalorder %s1866_s20, %s2630_s22 }
 0x39e   : > { %v1691_v63 = vmul.f32 %v1675_v55, %v1675_v55  ;;  %1160 = vst.msk [vmem:[%s3748_s26 + $0x30] sm:$0xff] %vm3995_vm2, %v1105_v20  ;;  %v1674_v58 = vsub.f32 %v1105_v20, %v2616_v0  ;;  %v1712_v61 = vsel %vm3996_vm3, %v1688_v57, 0.0  ;;  %vm4011_vm2 = vmmov %vm3997_vm0  ;;  %p2626_p12 = scmp.ne.s32.totalorder %s1866_s20, %s2625_s17  ;;  %p2633_p2 = scmp.lt.s32.totalorder %s2631_s23, %s2625_s17 }
 0x39f   : > { %v2408_v42 = vpop.f32.mrf.mxu1  ;;  %1713 = vadd.xlane.f32.xlu0 %v1712_v61  ;;  %vm4012_vm3 = vmmov %vm3997_vm0 }
 0x3a0   : > { %v1690_v44 = vmul.f32 %v1674_v58, %v1674_v58  ;;  %1163 = vst.msk [vmem:[%s3748_s26 + $0x48] sm:$0xff] %vm3997_vm0, %v2408_v42  ;;  %v1677_v4 = vsub.f32 %v2408_v42, %v2617_v36  ;;  %v1721_v48 = vsel %vm3998_vm4, %v1691_v63, 0.0  ;;  %vm4013_vm4 = vmmov %vm3997_vm0  ;;  %p2627_p13 = pnand %p2626_p12, %p2826_p4  ;;  %p2634_p3 = por %p2633_p2, %p2632_p1 }
 0x3a1   : > { %1722 = vadd.xlane.f32.xlu1 %v1721_v48  ;;  %v1115_v18 = vpop.f32.mrf.mxu1 }
 0x3a2   : > { %v1693_v34 = vmul.f32 %v1677_v4, %v1677_v4  ;;  %1162 = vst.msk [vmem:[%s3748_s26 + $0x40] sm:$0xff] %vm3999_vm5, %v1115_v18  ;;  %v1676_v50 = vsub.f32 %v1115_v18, %v2618_v28  ;;  %v1718_v9 = vsel %vm4000_vm6, %v1690_v44, 0.0  ;;  %vm372_vm5 = vcmask 0   ;;  %p2628_p0 = pneg %p2627_p13 }
 0x3a3   : > { %v2411_v2 = vpop.f32.mrf.mxu1  ;;  %1719 = vadd.xlane.f32.xlu0 %v1718_v9  ;;  %373 = vst.msk [vmem:[#allocation4] sm:$0x1] %vm372_vm5, %v2733_v51 }
 0x3a4   : > { %v1692_v12 = vmul.f32 %v1676_v50, %v1676_v50  ;;  %1165 = vst.msk [vmem:[%s3748_s26 + $0x58] sm:$0xff] %vm4001_vm7, %v2411_v2  ;;  %v1679_v10 = vsub.f32 %v2411_v2, %v2619_v62  ;;  %v1727_v17 = vsel %vm4002_vm8, %v1693_v34, 0.0  ;;  %p2635_p5 = pnand %p2634_p3, %p2628_p0 }
 0x3a5   : > { %1728 = vadd.xlane.f32.xlu1 %v1727_v17  ;;  %v1125_v43 = vpop.f32.mrf.mxu1 }
 0x3a6   : > { %v1695_v30 = vmul.f32 %v1679_v10, %v1679_v10  ;;  %1164 = vst.msk [vmem:[%s3748_s26 + $0x50] sm:$0xff] %vm4003_vm9, %v1125_v43  ;;  %v1678_v25 = vsub.f32 %v1125_v43, %v2620_v15  ;;  %v1724_v26 = vsel %vm4004_vm10, %v1692_v12, 0.0 }
 0x3a7   : > { %v2414_v14 = vpop.f32.mrf.mxu1  ;;  %1725 = vadd.xlane.f32.xlu0 %v1724_v26 }
 0x3a8   : > { %v1694_v38 = vmul.f32 %v1678_v25, %v1678_v25  ;;  %1167 = vst.msk [vmem:[%s3748_s26 + $0x68] sm:$0xff] %vm4005_vm11, %v2414_v14  ;;  %v1681_v23 = vsub.f32 %v2414_v14, %v2621_v21  ;;  %v1733_v33 = vsel %vm4006_vm12, %v1695_v30, 0.0 }
 0x3a9   : > { %1734 = vadd.xlane.f32.xlu1 %v1733_v33  ;;  %v1135_v41 = vpop.f32.mrf.mxu1 }
 0x3aa   : > { %v1697_v22 = vmul.f32 %v1681_v23, %v1681_v23  ;;  %1166 = vst.msk [vmem:[%s3748_s26 + $0x60] sm:$0xff] %vm4007_vm13, %v1135_v41  ;;  %v1680_v27 = vsub.f32 %v1135_v41, %v2622_v46  ;;  %v1730_v32 = vsel %vm4008_vm14, %v1694_v38, 0.0 }
 0x3ab   : > { %v2417_v39 = vpop.f32.mrf.mxu1  ;;  %1731 = vadd.xlane.f32.xlu0 %v1730_v32 }
 0x3ac   : > { %v1696_v52 = vmul.f32 %v1680_v27, %v1680_v27  ;;  %1169 = vst.msk [vmem:[%s3748_s26 + $0x78] sm:$0xff] %vm4009_vm15, %v2417_v39  ;;  %v1683_v49 = vsub.f32 %v2417_v39, %v2623_v53  ;;  %v1739_v60 = vsel %vm4010_vm1, %v1697_v22, 0.0 }
 0x3ad   : > { %1740 = vadd.xlane.f32.xlu1 %v1739_v60  ;;  %v1145_v5 = vpop.f32.mrf.mxu1 }
 0x3ae   : > { %v1699_v7 = vmul.f32 %v1683_v49, %v1683_v49  ;;  %1168 = vst.msk [vmem:[%s3748_s26 + $0x70] sm:$0xff] %vm4011_vm2, %v1145_v5  ;;  %v1682_v57 = vsub.f32 %v1145_v5, %v2624_v35  ;;  %v1736_v13 = vsel %vm4012_vm3, %v1696_v52, 0.0 }
 0x3af   : > { %1737 = vadd.xlane.f32.xlu0 %v1736_v13 }
 0x3b0   : > { %v1698_v55 = vmul.f32 %v1682_v57, %v1682_v57  ;;  %v1745_v3 = vsel %vm3997_vm0, %v1699_v7, 0.0 }
 0x3b1   : > { %1746 = vadd.xlane.f32.xlu1 %v1745_v3 }
 0x3b2   : > { %v1742_v20 = vsel %vm4013_vm4, %v1698_v55, 0.0 }
 0x3b3   : > { %1743 = vadd.xlane.f32.xlu0 %v1742_v20 }
 0x3eb   : > { %v1243_v63 = vpop.f32.mrf.mxu1 }
 0x3ec   : > { %v1247_v0 = vmul.f32 256.0, %v1243_v63  ;;  %v1249_v58 = vrot.slane %v1243_v63, 1 }
 0x3ed   : > { %v2452_v61 = vpop.f32.mrf.mxu1 }
 0x3ee   : > { %v1251_v42 = vadd.f32 %v1249_v58, %v1247_v0 }
 0x3f0   : > { %v2544_v44 = vtrunc.f32 %v1251_v42 }
 0x3f2   : > { %v2545_v36 = vcvt.f32.s32 %v2544_v44 }
 0x3f4   : > { %1253 = vst [vmem:[%s306_s28] sm:$0x1] %v2545_v36 }
 0x3f5   : > { %2638 = shalt.err (!%p2635_p5)
}
 0x3f6   : > { %s2639_s26 = scalar_lea.hbm %s1863_s13, 16  ;;  %s2643_s0 = scalar_lea.hbm %s3968_s5, 32 }
 0x3f7   : > { %p2640_p6 = scmp.ne.s32.totalorder %s1863_s13, %s2639_s26  ;;  %p2644_p10 = scmp.lt.s32.totalorder %s1863_s13, %s3968_s5 }
 0x3f8   : > { %p2645_p11 = scmp.lt.s32.totalorder %s2643_s0, %s2639_s26 }
 0x3f9   : > { %p2641_p7 = pnand %p2640_p6, %p2826_p4 }
 0x3fa   : > { %p2646_p12 = por %p2645_p11, %p2644_p10 }
 0x3fb   : > { %p2642_p9 = pneg %p2641_p7 }
 0x3fd   : > { %p2647_p13 = pnand %p2646_p12, %p2642_p9 }
 0x3ff   : > { %2650 = shalt.err (!%p2647_p13)
}
 0x400   : > { %2546 = dma.vmem_to_hbm [thread:$0]  (%p2826_p4), %s1866_s20, 16, %s1863_s13, %s1835_s15   ;;  %v1339_v51 = vld [vmem:[#allocation2 + $0x8] sm:$0xff]  ;;  %v1338_v48 = vld [vmem:[#allocation2] sm:$0xff]  ;;  %vm4014_vm6 = vmmov %vm3997_vm0 }
 0x401   : > { %p342_p0 = scmp.lt.s32.totalorder %s2723_s10, 1  ;;  %vm4015_vm7 = vmmov %vm3997_vm0  ;;  %v1341_v50 = vld [vmem:[#allocation2 + $0x18] sm:$0xff]  ;;  %v1340_v2 = vld [vmem:[#allocation2 + $0x10] sm:$0xff]  ;;  %s319_s15 = scalar_lea.vmem [#allocation9], %s3817_s25 }
 0x402   : > { %vm4016_vm8 = vmmov %vm3997_vm0  ;;  %v1343_v30 = vld [vmem:[#allocation2 + $0x28] sm:$0xff]  ;;  %v1342_v25 = vld [vmem:[#allocation2 + $0x20] sm:$0xff]  ;;  %s1881_s17 = sshll.u32 %s319_s15, 4  ;;  %s3917_s23 = scalar_lea.hbm %s3970_s7, %s2848_s24  ;;  %s1882_s17 = int_to_ptr.vmem [resolvable:$true] %s1881_s17 }
 0x403   : > { %s4052_s10 = smov (!%p342_p0, %s2723_s10), 1  ;;  %vm4017_vm9 = vmmov %vm3997_vm0  ;;  %v1345_v32 = vld [vmem:[#allocation2 + $0x38] sm:$0xff]  ;;  %v1344_v60 = vld [vmem:[#allocation2 + $0x30] sm:$0xff]  ;;  %s1844_s26 = scalar_lea.sflag [#allocation10], %s3817_s25 }
 0x404   : > { %s2175_s1 = sshll.u32 %s4052_s10, 7  ;;  %vm4018_vm10 = vmmov %vm3997_vm0  ;;  %v1347_v58 = vld [vmem:[#allocation2 + $0x48] sm:$0xff]  ;;  %s2651_s28 = scalar_lea.vmem %s1882_s17, 16 }
 0x405   : > { %s3847_s13 = scalar_lea.vmem %s3969_s6, %s2175_s1  ;;  %vm4019_vm11 = vmmov %vm3997_vm0  ;;  %p2652_p1 = scmp.ne.s32.totalorder %s1882_s17, %s2651_s28 }
 0x406   : > { %vm4020_vm12 = vmmov %vm3997_vm0  ;;  %s2737_s27 = smov [#allocation9]  }
 0x407   : > { %vm4021_vm13 = vmmov %vm3997_vm0  ;;  %p2653_p2 = pnand %p2652_p1, %p2826_p4  ;;  %s2655_s0 = sshll.u32 %s2737_s27, 4  ;;  %s2656_s0 = int_to_ptr.vmem [resolvable:$false] %s2655_s0 }
 0x408   : > { %vm4022_vm14 = vmmov %vm3997_vm0  ;;  %s2657_s1 = scalar_lea.vmem %s2656_s0, 32  ;;  %p2658_p5 = scmp.lt.s32.totalorder %s1882_s17, %s2656_s0 }
 0x409   : > { %vm4023_vm15 = vmmov %vm3997_vm0  ;;  %p2654_p3 = pneg %p2653_p2  ;;  %p2659_p6 = scmp.lt.s32.totalorder %s2657_s1, %s2651_s28 }
 0x40a   : > { %vm4024_vm1 = vmmov %vm3997_vm0 }
 0x40b   : > { %vm4025_vm2 = vmmov %vm3997_vm0  ;;  %p2660_p7 = por %p2659_p6, %p2658_p5 }
 0x40c   : > { %vm4026_vm3 = vmmov %vm3997_vm0 }
 0x40d   : > { %v2487_v4 = vpop.f32.mrf.mxu0  ;;  %vm4027_vm4 = vmmov %vm3997_vm0  ;;  %p2661_p9 = pnand %p2660_p7, %p2654_p3 }
 0x40e   : > { %v1532_v18 = vadd.f32 %v2487_v4, %v1339_v51  ;;  %v1346_v51 = vld [vmem:[#allocation2 + $0x40] sm:$0xff] }
 0x40f   : > { %v1452_v34 = vpop.f32.mrf.mxu0 }
 0x410   : > { %1548 = vst.msk [vmem:[#allocation2 + $0x8] sm:$0xff] %vm4014_vm6, %v1532_v18  ;;  %v1531_v28 = vadd.f32 %v1452_v34, %v1338_v48  ;;  %vm4028_vm6 = vmmov %vm3997_vm0 }
 0x412   : > { %1547 = vst.msk [vmem:[#allocation2] sm:$0xff] %vm4015_vm7, %v1531_v28  ;;  %vm4029_vm7 = vmmov %vm3997_vm0 }
 0x415   : > { %v2490_v9 = vpop.f32.mrf.mxu0 }
 0x416   : > { %v1534_v12 = vadd.f32 %v2490_v9, %v1341_v50 }
 0x417   : > { %v1793_v62 = vld [vmem:[#allocation2 + $0x8] sm:$0xff]  ;;  %v1462_v10 = vpop.f32.mrf.mxu0 }
 0x418   : > { %1550 = vst.msk [vmem:[#allocation2 + $0x18] sm:$0xff] %vm4016_vm8, %v1534_v12  ;;  %v1533_v17 = vadd.f32 %v1462_v10, %v1340_v2  ;;  %vm4030_vm8 = vmmov %vm3997_vm0  ;;  %v1349_v10 = vld [vmem:[#allocation2 + $0x58] sm:$0xff] }
 0x419   : > { %1809 = vst.msk [vmem:[%s3847_s13 + $0x8] sm:$0xff] %vm4017_vm9, %v1793_v62  ;;  %v1792_v43 = vld [vmem:[#allocation2] sm:$0xff]  ;;  %vm4031_vm9 = vmmov %vm3997_vm0 }
 0x41a   : > { %1549 = vst.msk [vmem:[#allocation2 + $0x10] sm:$0xff] %vm4018_vm10, %v1533_v17  ;;  %vm4032_vm10 = vmmov %vm3997_vm0 }
 0x41b   : > { %1808 = vst.msk [vmem:[%s3847_s13] sm:$0xff] %vm4019_vm11, %v1792_v43  ;;  %vm4033_vm11 = vmmov %vm3997_vm0 }
 0x41d   : > { %v2493_v15 = vpop.f32.mrf.mxu0 }
 0x41e   : > { %v1705_v26 = vpop.xlane.xlu1 %1704  ;;  %v1536_v14 = vadd.f32 %v2493_v15, %v1343_v30 }
 0x41f   : > { %v1795_v38 = vld [vmem:[#allocation2 + $0x18] sm:$0xff]  ;;  %v1472_v21 = vpop.f32.mrf.mxu0  ;;  %v1749_v27 = vmul.f32 %v3270_v8, %v1705_v26 }
 0x420   : > { %1552 = vst.msk [vmem:[#allocation2 + $0x28] sm:$0xff] %vm4020_vm12, %v1536_v14  ;;  %v1702_v23 = vpop.xlane.xlu0 %1701  ;;  %v1535_v33 = vadd.f32 %v1472_v21, %v1342_v25  ;;  %v1348_v25 = vld [vmem:[#allocation2 + $0x50] sm:$0xff]  ;;  %vm4034_vm12 = vmmov %vm3997_vm0 }
 0x421   : > { %1811 = vst.msk [vmem:[%s3847_s13 + $0x18] sm:$0xff] %vm4021_vm13, %v1795_v38  ;;  %v1794_v41 = vld [vmem:[#allocation2 + $0x10] sm:$0xff]  ;;  %v1748_v22 = vmul.f32 %v3263_v6, %v1702_v23  ;;  %vm4035_vm13 = vmmov %vm3997_vm0 }
 0x422   : > { %1551 = vst.msk [vmem:[#allocation2 + $0x20] sm:$0xff] %vm4022_vm14, %v1535_v33  ;;  %v1711_v46 = vpop.xlane.xlu1 %1710  ;;  %vm4036_vm14 = vmmov %vm3997_vm0 }
 0x423   : > { %1810 = vst.msk [vmem:[%s3847_s13 + $0x10] sm:$0xff] %vm4023_vm15, %v1794_v41  ;;  %v1765_v52 = vadd.f32 %v1749_v27, %v1748_v22  ;;  %v1751_v6 = vmul.f32 %v3284_v16, %v1711_v46  ;;  %v1351_v27 = vld [vmem:[#allocation2 + $0x68] sm:$0xff]  ;;  %vm4037_vm15 = vmmov %vm3997_vm0 }
 0x424   : > { %v1708_v39 = vpop.xlane.xlu0 %1707 }
 0x425   : > { %v1750_v53 = vmul.f32 %v3277_v29, %v1708_v39  ;;  %v2496_v49 = vpop.f32.mrf.mxu0 }
 0x426   : > { %v1717_v5 = vpop.xlane.xlu1 %1716  ;;  %v1538_v7 = vadd.f32 %v2496_v49, %v1345_v32 }
 0x427   : > { %v1797_v35 = vld [vmem:[#allocation2 + $0x28] sm:$0xff]  ;;  %v1766_v57 = vadd.f32 %v1765_v52, %v1750_v53  ;;  %v1482_v13 = vpop.f32.mrf.mxu0  ;;  %v1753_v0 = vmul.f32 %v3298_v24, %v1717_v5 }
 0x428   : > { %1554 = vst.msk [vmem:[#allocation2 + $0x38] sm:$0xff] %vm4024_vm1, %v1538_v7  ;;  %v1714_v55 = vpop.xlane.xlu0 %1713  ;;  %v1537_v8 = vadd.f32 %v1482_v13, %v1344_v60  ;;  %v1350_v60 = vld [vmem:[#allocation2 + $0x60] sm:$0xff]  ;;  %vm4038_vm1 = vmmov %vm3997_vm0 }
 0x429   : > { %1813 = vst.msk [vmem:[%s3847_s13 + $0x28] sm:$0xff] %vm4025_vm2, %v1797_v35  ;;  %v1796_v3 = vld [vmem:[#allocation2 + $0x20] sm:$0xff]  ;;  %v1767_v20 = vadd.f32 %v1766_v57, %v1751_v6  ;;  %v1752_v29 = vmul.f32 %v3291_v37, %v1714_v55  ;;  %v1353_v55 = vld [vmem:[#allocation2 + $0x78] sm:$0xff]  ;;  %vm4039_vm2 = vmmov %vm3997_vm0 }
 0x42a   : > { %1553 = vst.msk [vmem:[#allocation2 + $0x30] sm:$0xff] %vm4026_vm3, %v1537_v8  ;;  %v1723_v63 = vpop.xlane.xlu1 %1722  ;;  %vm4040_vm3 = vmmov %vm3997_vm0 }
 0x42b   : > { %1812 = vst.msk [vmem:[%s3847_s13 + $0x20] sm:$0xff] %vm3997_vm0, %v1796_v3  ;;  %v1768_v16 = vadd.f32 %v1767_v20, %v1752_v29  ;;  %v1755_v18 = vmul.f32 %v3314_v40, %v1723_v63 }
 0x42c   : > { %v1720_v61 = vpop.xlane.xlu0 %1719 }
 0x42d   : > { %v1769_v42 = vadd.f32 %v1768_v16, %v1753_v0  ;;  %v1754_v44 = vmul.f32 %v3305_v45, %v1720_v61  ;;  %v2499_v36 = vpop.f32.mrf.mxu0  ;;  %v1563_v16 = vld [vmem:[#allocation3] sm:$0x1] }
 0x42e   : > { %v1729_v4 = vpop.xlane.xlu1 %1728  ;;  %v1540_v48 = vadd.f32 %v2499_v36, %v1347_v58 }
 0x42f   : > { %v1799_v37 = vld [vmem:[#allocation2 + $0x38] sm:$0xff]  ;;  %v1770_v34 = vadd.f32 %v1769_v42, %v1754_v44  ;;  %v1492_v28 = vpop.f32.mrf.mxu0  ;;  %v1757_v62 = vmul.f32 %v3328_v59, %v1729_v4 }
 0x430   : > { %1556 = vst.msk [vmem:[#allocation2 + $0x48] sm:$0xff] %vm4027_vm4, %v1540_v48  ;;  %v1726_v24 = vpop.xlane.xlu0 %1725  ;;  %v1539_v50 = vadd.f32 %v1492_v28, %v1346_v51  ;;  %vm4041_vm4 = vmmov %vm3997_vm0  ;;  %v1764_v48 = vld [vmem:[#allocation4] sm:$0x1] }
 0x431   : > { %1815 = vst.msk [vmem:[%s3847_s13 + $0x38] sm:$0xff] %vm4028_vm6, %v1799_v37  ;;  %v1798_v9 = vld [vmem:[#allocation2 + $0x30] sm:$0xff]  ;;  %v1771_v2 = vadd.f32 %v1770_v34, %v1755_v18  ;;  %v1756_v45 = vmul.f32 %v3321_v54, %v1726_v24  ;;  %vm4042_vm6 = vmmov %vm3997_vm0 }
 0x432   : > { %1555 = vst.msk [vmem:[#allocation2 + $0x40] sm:$0xff] %vm4029_vm7, %v1539_v50  ;;  %v1735_v12 = vpop.xlane.xlu1 %1734  ;;  %vm4043_vm7 = vmmov %vm3997_vm0 }
 0x433   : > { %1814 = vst.msk [vmem:[%s3847_s13 + $0x30] sm:$0xff] %vm4030_vm8, %v1798_v9  ;;  %v1772_v40 = vadd.f32 %v1771_v2, %v1756_v45  ;;  %v1759_v38 = vmul.f32 %v3342_v11, %v1735_v12 }
 0x434   : > { %v1732_v17 = vpop.xlane.xlu0 %1731 }
 0x435   : > { %v1773_v43 = vadd.f32 %v1772_v40, %v1757_v62  ;;  %v1758_v30 = vmul.f32 %v3335_v47, %v1732_v17  ;;  %v2502_v15 = vpop.f32.mrf.mxu0 }
 0x436   : > { %v1741_v26 = vpop.xlane.xlu1 %1740  ;;  %v1542_v14 = vadd.f32 %v2502_v15, %v1349_v10 }
 0x437   : > { %v1801_v54 = vld [vmem:[#allocation2 + $0x48] sm:$0xff]  ;;  %v1774_v21 = vadd.f32 %v1773_v43, %v1758_v30  ;;  %v1502_v23 = vpop.f32.mrf.mxu0  ;;  %v1761_v46 = vmul.f32 %v3355_v19, %v1741_v26 }
 0x438   : > { %1558 = vst.msk [vmem:[#allocation2 + $0x58] sm:$0xff] %vm4031_vm9, %v1542_v14  ;;  %v1738_v59 = vpop.xlane.xlu0 %1737  ;;  %v1541_v33 = vadd.f32 %v1502_v23, %v1348_v25 }
 0x439   : > { %1817 = vst.msk [vmem:[%s3847_s13 + $0x48] sm:$0xff] %vm4032_vm10, %v1801_v54  ;;  %v1800_v41 = vld [vmem:[#allocation2 + $0x40] sm:$0xff]  ;;  %v1775_v22 = vadd.f32 %v1774_v21, %v1759_v38  ;;  %v1760_v47 = vmul.f32 %v3349_v56, %v1738_v59 }
 0x43a   : > { %1557 = vst.msk [vmem:[#allocation2 + $0x50] sm:$0xff] %vm4033_vm11, %v1541_v33  ;;  %v1747_v32 = vpop.xlane.xlu1 %1746 }
 0x43b   : > { %1816 = vst.msk [vmem:[%s3847_s13 + $0x40] sm:$0xff] %vm4034_vm12, %v1800_v41  ;;  %v1776_v11 = vadd.f32 %v1775_v22, %v1760_v47  ;;  %v1763_v56 = vmul.f32 %v3376_v31, %v1747_v32  ;;  %v1352_v31 = vld [vmem:[#allocation2 + $0x70] sm:$0xff] }
 0x43c   : > { %v1744_v39 = vpop.xlane.xlu0 %1743 }
 0x43d   : > { %v1777_v52 = vadd.f32 %v1776_v11, %v1761_v46  ;;  %v1762_v53 = vmul.f32 %v3362_v1, %v1744_v39  ;;  %v2505_v49 = vpop.f32.mrf.mxu0 }
 0x43e   : > { %v1544_v5 = vadd.f32 %v2505_v49, %v1351_v27 }
 0x43f   : > { %v1803_v7 = vld [vmem:[#allocation2 + $0x58] sm:$0xff]  ;;  %v1778_v35 = vadd.f32 %v1777_v52, %v1762_v53  ;;  %v1512_v6 = vpop.f32.mrf.mxu0 }
 0x440   : > { %1819 = vst.msk [vmem:[%s3847_s13 + $0x58] sm:$0xff] %vm4035_vm13, %v1803_v7  ;;  %v1543_v19 = vadd.f32 %v1512_v6, %v1350_v60 }
 0x441   : > { %1560 = vst.msk [vmem:[#allocation2 + $0x68] sm:$0xff] %vm4036_vm14, %v1544_v5  ;;  %v1802_v57 = vld [vmem:[#allocation2 + $0x50] sm:$0xff]  ;;  %v1779_v13 = vadd.f32 %v1778_v35, %v1763_v56 }
 0x442   : > { %1818 = vst.msk [vmem:[%s3847_s13 + $0x50] sm:$0xff] %vm4037_vm15, %v1802_v57 }
 0x443   : > { %1559 = vst.msk [vmem:[#allocation2 + $0x60] sm:$0xff] %vm4038_vm1, %v1543_v19  ;;  %v1780_v1 = vrot.slane %v1779_v13, 4 }
 0x445   : > { %v1781_v8 = vadd.f32 %v1780_v1, %v1779_v13  ;;  %v2508_v3 = vpop.f32.mrf.mxu0 }
 0x446   : > { %v1546_v20 = vadd.f32 %v2508_v3, %v1353_v55 }
 0x447   : > { %v1782_v29 = vrot.slane %v1781_v8, 2  ;;  %v1522_v0 = vpop.f32.mrf.mxu0 }
 0x448   : > { %v1805_v63 = vld [vmem:[#allocation2 + $0x68] sm:$0xff]  ;;  %1562 = vst.msk [vmem:[#allocation2 + $0x78] sm:$0xff] %vm4040_vm3, %v1546_v20  ;;  %v1545_v58 = vadd.f32 %v1522_v0, %v1352_v31 }
 0x449   : > { %1821 = vst.msk [vmem:[%s3847_s13 + $0x68] sm:$0xff] %vm4039_vm2, %v1805_v63  ;;  %v1783_v61 = vadd.f32 %v1782_v29, %v1781_v8  ;;  %v1662_v44 = vpop.f32.mrf.mxu0 }
 0x44a   : > { %v1804_v42 = vld [vmem:[#allocation2 + $0x60] sm:$0xff]  ;;  %1561 = vst.msk [vmem:[#allocation2 + $0x70] sm:$0xff] %vm4041_vm4, %v1545_v58  ;;  %v1666_v36 = vadd.f32 %v1662_v44, %v1563_v16 }
 0x44b   : > { %1820 = vst.msk [vmem:[%s3847_s13 + $0x60] sm:$0xff] %vm3997_vm0, %v1804_v42  ;;  %v1784_v51 = vrot.slane %v1783_v61, 1  ;;  %v2543_v4 = vpop.f32.mrf.mxu0 }
 0x44c   : > { %1667 = vst [vmem:[#allocation3] sm:$0x1] %v1666_v36 }
 0x44d   : > { %v1785_v37 = vadd.f32 %v1784_v51, %v1783_v61 }
 0x44f   : > { %v1786_v18 = vadd.f32 %v1785_v37, %v1764_v48  ;;  %v1807_v34 = vld [vmem:[#allocation2 + $0x78] sm:$0xff] }
 0x450   : > { %1823 = vst.msk [vmem:[%s3847_s13 + $0x78] sm:$0xff] %vm4042_vm6, %v1807_v34 }
 0x451   : > { %1788 = vst.msk [vmem:[#allocation4] sm:$0x1] %vm372_vm5, %v1786_v18  ;;  %v1806_v28 = vld [vmem:[#allocation2 + $0x70] sm:$0xff] }
 0x452   : > { %1822 = vst.msk [vmem:[%s3847_s13 + $0x70] sm:$0xff] %vm4043_vm7, %v1806_v28 }
 0x453   : > { %v1824_v24 = vld [vmem:[#allocation3] sm:$0x1] }
 0x454   : > { %1825 = vst [vmem:[%s319_s15] sm:$0x1] %v1824_v24 }
 0x455   : > { %2664 = shalt.err (!%p2661_p9)
}
 0x456   : > { %s2665_s24 = scalar_lea.hbm %s3917_s23, 16  ;;  %s2669_s20 = scalar_lea.hbm %s3970_s7, 32 }
 0x457   : > { %p2666_p10 = scmp.ne.s32.totalorder %s3917_s23, %s2665_s24  ;;  %p2670_p13 = scmp.lt.s32.totalorder %s3917_s23, %s3970_s7 }
 0x458   : > { %p2671_p0 = scmp.lt.s32.totalorder %s2669_s20, %s2665_s24 }
 0x459   : > { %p2667_p11 = pnand %p2666_p10, %p2826_p4 }
 0x45a   : > { %p2672_p1 = por %p2671_p0, %p2670_p13 }
 0x45b   : > { %p2668_p12 = pneg %p2667_p11 }
 0x45d   : > { %p2673_p2 = pnand %p2672_p1, %p2668_p12 }
 0x45f   : > { %2676 = shalt.err (!%p2673_p2)
}
 0x460   : > { %2547 = dma.vmem_to_hbm [thread:$0]  (%p2826_p4), %s1882_s17, 16, %s3917_s23, %s1844_s26   ;;  %v1826_v50 = vld [vmem:[#allocation4] sm:$0x1] }
 0x461   : > { %s349_s28 = scalar_lea.vmem %s3971_s8, %s4052_s10 }
 0x462   : > { %1827 = vst.msk [vmem:[%s349_s28] sm:$0x1] %vm372_vm5, %v1826_v50 }
 0x463 PF: > { %p2557_p3 = scmp.ge.s32.totalorder %s2731_s12, 2  ;;  %s1905_s27 = sand.u32 1, %s2711_s29  }
 0x464   : > { %s1906_s16 = scalar_lea.sflag [#allocation8], %s1905_s27 }
 0x465   : > { %p2551_p5 = pnand %p2557_p3, %p2833_p8 }
 0x467   : > { %p2552_p6 = pneg %p2551_p5 }
 0x469   : > { %2702 = dma.done.wait (%p2552_p6), %s1906_s16, 16  }
 0x46a   : > { %2704 = vsyncadd (%p2552_p6), %s1906_s16, 4294967280  ;;  %s1922_s17 = scalar_lea.sflag [#allocation10], %s1905_s27 }
 0x46b   : > { %2706 = dma.done.wait (%p2552_p6), %s1922_s17, 16  }
 0x46c   : > { %2708 = vsyncadd (%p2552_p6), %s1922_s17, 4294967280  ;;  %s26_s12 = sadd.s32 1, %s2731_s12   ;;  %s4044_s29 = smov %s2715_s30 }
 0x46d   : > { %p23_p4 = scmp.ge.s32.totalorder %s26_s12, 4   ;;  %s4045_s30 = smov %s2719_s9 }
 0x46e   : > { %s4046_s9 = smov %s2839_s19  ;;  %s4047_s10 = smov %s2727_s11 }
 0x46f   : > { %s4048_s11 = smov %s4050_s14  ;;  %25 = sbr.rel (!%p23_p4) target bundleno = 10 (0xa), region = 128 }
 0x474   :  { %1932 = vsyncpa [#allocation8], 1 }
 0x475   :  { %1934 = vsyncpa [#allocation8 + $0x1], 1 }
 0x476   :  { %1935 = vsyncpa [#allocation10], 1 }
 0x477   :  { %1937 = vsyncpa [#allocation10 + $0x1], 1 }

</bundles_post_ra>
